<compile_context>
chip_gen: v5e
topology: v5e:2x2
jax: 0.10.0
libtpu: 0.0.40
codegen_flags: <defaults>
</compile_context>

<pallas_src>
import jax
import jax.numpy as jnp
from jax import lax
from jax.experimental import pallas as pl
from jax.experimental.pallas import tpu as pltpu


def convlstm_step_kernel(xpre_ref, whb_ref, wci_ref, wcf_ref, wco_ref,
                         out_ref, cfin_ref, hp_scr):
    t = pl.program_id(0)
    B, Hp2, WF = hp_scr.shape            # (B, H+2, W*F), bf16
    H = Hp2 - 2
    BH = B * H
    K = whb_ref.shape[0] // WF            # number of kh taps

    # states=None in the PyTorch module -> zero-init h, c at the first step.
    # cfin_ref has a t-constant index_map, so it stays VMEM-resident across the
    # whole sequence and doubles as the recurrent cell state.
    @pl.when(t == 0)
    def _():
        hp_scr[...] = jnp.zeros_like(hp_scr)
        cfin_ref[...] = jnp.zeros_like(cfin_ref)

    hp = hp_scr[...]                                       # (B, H+2, W*F) bf16
    # Fuse the K row taps into one lane-dense operand: (B*H, K*W*F).
    hfused = jnp.concatenate(
        [hp[:, kh:kh + H, :] for kh in range(K)], axis=-1).reshape(BH, K * WF)

    c = cfin_ref[...]                                      # (B*H, W*F) f32

    # conv2d(cat([x, h])) + bias == precomputed x-path pre-activation (with
    # bias folded in) + one banded matmul over the hidden path.  Columns are
    # ordered (gate, w, f): lane-dense, gate slices aligned to 128 lanes.
    acc = xpre_ref[0] + jnp.dot(hfused, whb_ref[...],
                                preferred_element_type=jnp.float32)

    i_g = acc[:, 0 * WF:1 * WF]
    f_g = acc[:, 1 * WF:2 * WF]
    g_g = acc[:, 2 * WF:3 * WF]
    o_g = acc[:, 3 * WF:4 * WF]

    i = jax.nn.sigmoid(i_g + wci_ref[...] * c)
    f = jax.nn.sigmoid(f_g + wcf_ref[...] * c)
    c_new = f * c + i * jnp.tanh(g_g)
    o = jax.nn.sigmoid(o_g + wco_ref[...] * c_new)
    h_new = o * jnp.tanh(c_new)

    cfin_ref[...] = c_new
    hp_scr[:, 1:H + 1, :] = h_new.reshape(B, H, WF).astype(hp_scr.dtype)
    out_ref[0] = h_new.astype(out_ref.dtype)


def conv_lstm_cell_pallas(inputs, weight, bias, Wci, Wcf, Wco, num_filter):
    """inputs: (T, B, Cin, H, W); weight: (4F, Cin+F, K, K); bias: (4F,);
    Wci/Wcf/Wco: (1, F, H, W).  Returns (outputs (T,B,F,H,W), (h, c))."""
    T, B, Cin, H, W = inputs.shape
    F = num_filter
    K = weight.shape[-1]
    WF = W * F
    GF = 4 * W * F
    BH = B * H

    # ---- banded conv weights: for each kh tap, a (W*C, 4*W*F) block-banded
    # matrix so that  row_patch(W*C) @ band  ==  all W outputs of the 1-D
    # (along W) conv for that kh, laid out as (gate, w, f) columns.
    w = weight.astype(jnp.float32)
    eyes = jnp.stack([jnp.eye(W, k=1 - kw, dtype=jnp.float32) for kw in range(K)])

    def banded(w_part, out_dtype):            # (4F, C, K, K) -> (K, W*C, 4*W*F)
        C = w_part.shape[1]
        wp = w_part.reshape(4, F, C, K, K)    # (g, fo, ci, kh, kw)
        band = jnp.einsum('kio,gfchk->hicgof', eyes, wp)   # (kh, wi, ci, g, wo, fo)
        return band.reshape(K, W * C, GF).astype(out_dtype)

    wxb = banded(w[:, :Cin], jnp.float32).reshape(K * W * Cin, GF)   # x path (XLA)
    whb = banded(w[:, Cin:], jnp.bfloat16).reshape(K * WF, GF)       # h path (kernel)

    # bias replicated over W to match the (gate, w, f) column order.
    b_row = jnp.tile(bias.astype(jnp.float32).reshape(4, 1, F),
                     (1, W, 1)).reshape(GF)

    # ---- x-path conv hoisted out of the recurrence: one big GEMM over all
    # (T, B, H) rows, bias folded in.  Output is the per-step pre-activation.
    x = jnp.transpose(inputs, (0, 1, 3, 4, 2)).astype(jnp.float32)   # (T,B,H,W,Cin)
    x = x.reshape(T, B, H, W * Cin)
    xp = jnp.pad(x, ((0, 0), (0, 0), (1, 1), (0, 0)))                # (T,B,H+2,W*Cin)
    xrows = jnp.concatenate([xp[:, :, kh:kh + H, :] for kh in range(K)],
                            axis=-1).reshape(T * B * H, K * W * Cin)
    xpre = (xrows @ wxb + b_row[None, :]).reshape(T, BH, GF)         # f32

    # peephole weights -> lane-dense (H, W*F), tiled over B to (B*H, W*F).
    def peep(wc):
        p = jnp.transpose(wc[0], (1, 2, 0)).reshape(H, WF).astype(jnp.float32)
        return jnp.tile(p, (B, 1))

    wci, wcf, wco = peep(Wci), peep(Wcf), peep(Wco)

    out_shapes = (
        jax.ShapeDtypeStruct((T, BH, WF), jnp.bfloat16),   # per-step h (lane-dense)
        jax.ShapeDtypeStruct((BH, WF), jnp.float32),       # final c (recurrent state)
    )
    in_specs = [
        pl.BlockSpec((1, BH, GF), lambda t: (t, 0, 0)),     # xpre per step
        pl.BlockSpec((K * WF, GF), lambda t: (0, 0)),       # fused banded h weight
        pl.BlockSpec((BH, WF), lambda t: (0, 0)),           # Wci
        pl.BlockSpec((BH, WF), lambda t: (0, 0)),           # Wcf
        pl.BlockSpec((BH, WF), lambda t: (0, 0)),           # Wco
    ]
    out_specs = (
        pl.BlockSpec((1, BH, WF), lambda t: (t, 0, 0)),
        pl.BlockSpec((BH, WF), lambda t: (0, 0)),           # t-constant -> resident
    )

    out_seq, c_fin = pl.pallas_call(
        convlstm_step_kernel,
        out_shape=out_shapes,
        grid_spec=pltpu.PrefetchScalarGridSpec(
            num_scalar_prefetch=0,
            grid=(T,),
            in_specs=in_specs,
            out_specs=out_specs,
            scratch_shapes=[pltpu.VMEM((B, H + 2, WF), jnp.bfloat16)]),
        compiler_params=pltpu.CompilerParams(
            dimension_semantics=("arbitrary",)),
    )(xpre, whb, wci, wcf, wco)

    # back to PyTorch conventions
    out_seq = out_seq.astype(jnp.float32).reshape(T, B, H, W, F)
    out_seq = jnp.transpose(out_seq, (0, 1, 4, 2, 3))       # (T, B, F, H, W)
    h_fin = out_seq[-1]
    c_fin = jnp.transpose(c_fin.reshape(B, H, W, F), (0, 3, 1, 2))
    return out_seq, (h_fin, c_fin)


def conv_lstm_cell_ref(inputs, weight, bias, Wci, Wcf, Wco, num_filter):
    """Plain-JAX replica of the PyTorch forward (NCHW), for validation."""
    T, B, Cin, H, W = inputs.shape
    F = num_filter
    h = jnp.zeros((B, F, H, W), jnp.float32)
    c = jnp.zeros((B, F, H, W), jnp.float32)
    outs = []
    for t in range(T):
        cat = jnp.concatenate([inputs[t], h], axis=1)
        conv = lax.conv_general_dilated(
            cat, weight, window_strides=(1, 1), padding=((1, 1), (1, 1)),
            dimension_numbers=('NCHW', 'OIHW', 'NCHW'))
        conv = conv + bias[None, :, None, None]
        i_g, f_g, g_g, o_g = jnp.split(conv, 4, axis=1)
        i = jax.nn.sigmoid(i_g + Wci * c)
        f = jax.nn.sigmoid(f_g + Wcf * c)
        c = f * c + i * jnp.tanh(g_g)
        o = jax.nn.sigmoid(o_g + Wco * c)
        h = o * jnp.tanh(c)
        outs.append(h)
    return jnp.stack(outs), (h, c)


if __name__ == "__main__":
    # ConvLSTMCell(input_channel=4, num_filter=8, b_h_w=(2,16,16),
    #              kernel_size=3, stride=1, padding=1, seq_len=8)
    T, B, Cin, F, H, W, K = 8, 2, 4, 8, 16, 16, 3

    key = jax.random.PRNGKey(0)
    k_w, k_b, k_x, k_i, k_f, k_o = jax.random.split(key, 6)

    weight = jax.random.normal(k_w, (4 * F, Cin + F, K, K), jnp.float32) * 0.1
    bias = jax.random.normal(k_b, (4 * F,), jnp.float32) * 0.1
    # The module initializes Wci/Wcf/Wco as zero buffers; use small random
    # values here so the peephole path is actually exercised numerically.
    Wci = jax.random.normal(k_i, (1, F, H, W), jnp.float32) * 0.1
    Wcf = jax.random.normal(k_f, (1, F, H, W), jnp.float32) * 0.1
    Wco = jax.random.normal(k_o, (1, F, H, W), jnp.float32) * 0.1

    inputs = jax.random.normal(k_x, (T, B, Cin, H, W), jnp.float32)

    out, (h_fin, c_fin) = conv_lstm_cell_pallas(
        inputs, weight, bias, Wci, Wcf, Wco, F)
    out = jax.block_until_ready(out)
    h_fin = jax.block_until_ready(h_fin)
    c_fin = jax.block_until_ready(c_fin)

    ref_out, (ref_h, ref_c) = conv_lstm_cell_ref(
        inputs, weight, bias, Wci, Wcf, Wco, F)

    assert out.shape == (T, B, F, H, W)
    assert h_fin.shape == (B, F, H, W) and c_fin.shape == (B, F, H, W)
    assert jnp.allclose(out, ref_out, atol=3e-2, rtol=3e-2)
    assert jnp.allclose(h_fin, ref_h, atol=3e-2, rtol=3e-2)
    assert jnp.allclose(c_fin, ref_c, atol=3e-2, rtol=3e-2)

    print("KERNEL_OK")
</pallas_src>

<mosaic_0001>
module attributes {stable_mosaic.version = 11 : i64} {
  func.func @convlstm_step_kernel(%arg0: i32, %arg1: memref<1x32x512xf32, #tpu.memory_space<vmem>>, %arg2: memref<384x512xbf16, #tpu.memory_space<vmem>>, %arg3: memref<32x128xf32, #tpu.memory_space<vmem>>, %arg4: memref<32x128xf32, #tpu.memory_space<vmem>>, %arg5: memref<32x128xf32, #tpu.memory_space<vmem>>, %arg6: memref<1x32x128xbf16, #tpu.memory_space<vmem>>, %arg7: memref<32x128xf32, #tpu.memory_space<vmem>>, %arg8: memref<2x18x128xbf16, #tpu.memory_space<vmem>>) attributes {dimension_semantics = [#tpu.dimension_semantics<arbitrary>], iteration_bounds = array<i64: 8>, scalar_prefetch = 0 : i64, scratch_operands = 1 : i64, tpu.core_type = #tpu.core_type<tc>, window_params = [{transform_indices = @transform_0, window_bounds = array<i64: 1, 32, 512>}, {pipeline_mode = #tpu.pipeline_mode<synchronous>, transform_indices = @transform_1, window_bounds = array<i64: 384, 512>}, {pipeline_mode = #tpu.pipeline_mode<synchronous>, transform_indices = @transform_2, window_bounds = array<i64: 32, 128>}, {pipeline_mode = #tpu.pipeline_mode<synchronous>, transform_indices = @transform_3, window_bounds = array<i64: 32, 128>}, {pipeline_mode = #tpu.pipeline_mode<synchronous>, transform_indices = @transform_4, window_bounds = array<i64: 32, 128>}, {transform_indices = @transform_5, window_bounds = array<i64: 1, 32, 128>}, {pipeline_mode = #tpu.pipeline_mode<synchronous>, transform_indices = @transform_6, window_bounds = array<i64: 32, 128>}]} {
    %c0_i32 = arith.constant 0 : i32
    %0 = arith.cmpi eq, %arg0, %c0_i32 : i32
    %1 = arith.extui %0 : i1 to i32
    %c0_i32_0 = arith.constant 0 : i32
    %2 = arith.cmpi ne, %1, %c0_i32_0 : i32
    scf.if %2 {
      %cst_26 = arith.constant 0.000000e+00 : bf16
      %57 = vector.broadcast %cst_26 : bf16 to vector<2x18x128xbf16>
      %c0_27 = arith.constant 0 : index
      %c0_28 = arith.constant 0 : index
      %c0_29 = arith.constant 0 : index
      %58 = vector.load %arg8[%c0_27, %c0_28, %c0_29] : memref<2x18x128xbf16, #tpu.memory_space<vmem>>, vector<2x18x128xbf16>
      tpu.vector_store %arg8[%c0_27, %c0_28, %c0_29], %57 {strides = array<i32>} : memref<2x18x128xbf16, #tpu.memory_space<vmem>>, vector<2x18x128xbf16>,
      %cst_30 = arith.constant 0.000000e+00 : f32
      %59 = vector.broadcast %cst_30 : f32 to vector<32x128xf32>
      %c0_31 = arith.constant 0 : index
      %c0_32 = arith.constant 0 : index
      %60 = vector.load %arg7[%c0_31, %c0_32] : memref<32x128xf32, #tpu.memory_space<vmem>>, vector<32x128xf32>
      tpu.vector_store %arg7[%c0_31, %c0_32], %59 {strides = array<i32>} : memref<32x128xf32, #tpu.memory_space<vmem>>, vector<32x128xf32>,
    } else {
    }
    %c0 = arith.constant 0 : index
    %c0_1 = arith.constant 0 : index
    %c0_2 = arith.constant 0 : index
    %3 = vector.load %arg8[%c0, %c0_1, %c0_2] : memref<2x18x128xbf16, #tpu.memory_space<vmem>>, vector<2x18x128xbf16>
    %4 = vector.extract_strided_slice %3 {offsets = [0, 0, 0], sizes = [2, 16, 128], strides = [1, 1, 1]} : vector<2x18x128xbf16> to vector<2x16x128xbf16>
    %5 = vector.extract_strided_slice %3 {offsets = [0, 1, 0], sizes = [2, 16, 128], strides = [1, 1, 1]} : vector<2x18x128xbf16> to vector<2x16x128xbf16>
    %6 = vector.extract_strided_slice %3 {offsets = [0, 2, 0], sizes = [2, 16, 128], strides = [1, 1, 1]} : vector<2x18x128xbf16> to vector<2x16x128xbf16>
    %7 = tpu.concatenate %4, %5, %6 in 2 : vector<2x16x128xbf16>, vector<2x16x128xbf16>, vector<2x16x128xbf16> -> vector<2x16x384xbf16>
    %8 = vector.shape_cast %7 : vector<2x16x384xbf16> to vector<32x384xbf16>
    %c0_3 = arith.constant 0 : index
    %c0_4 = arith.constant 0 : index
    %9 = vector.load %arg7[%c0_3, %c0_4] : memref<32x128xf32, #tpu.memory_space<vmem>>, vector<32x128xf32>
    %c0_5 = arith.constant 0 : index
    %c0_6 = arith.constant 0 : index
    %c0_7 = arith.constant 0 : index
    %10 = vector.load %arg1[%c0_5, %c0_6, %c0_7] : memref<1x32x512xf32, #tpu.memory_space<vmem>>, vector<1x32x512xf32>
    %11 = vector.shape_cast %10 : vector<1x32x512xf32> to vector<32x512xf32>
    %c0_8 = arith.constant 0 : index
    %c0_9 = arith.constant 0 : index
    %12 = vector.load %arg2[%c0_8, %c0_9] : memref<384x512xbf16, #tpu.memory_space<vmem>>, vector<384x512xbf16>
    %cst = arith.constant dense<0.000000e+00> : vector<32x512xf32>
    %13 = tpu.matmul %8, %12, %cst {dimension_numbers = #tpu.dot_dimension_numbers<[1], [0], [0], [1], [0, 0, 1, 1], [], []>} : vector<32x384xbf16>, vector<384x512xbf16>, vector<32x512xf32> -> vector<32x512xf32>
    %14 = arith.addf %11, %13 : vector<32x512xf32>
    %15 = vector.extract_strided_slice %14 {offsets = [0, 0], sizes = [32, 128], strides = [1, 1]} : vector<32x512xf32> to vector<32x128xf32>
    %16 = vector.extract_strided_slice %14 {offsets = [0, 128], sizes = [32, 128], strides = [1, 1]} : vector<32x512xf32> to vector<32x128xf32>
    %17 = vector.extract_strided_slice %14 {offsets = [0, 256], sizes = [32, 128], strides = [1, 1]} : vector<32x512xf32> to vector<32x128xf32>
    %18 = vector.extract_strided_slice %14 {offsets = [0, 384], sizes = [32, 128], strides = [1, 1]} : vector<32x512xf32> to vector<32x128xf32>
    %c0_10 = arith.constant 0 : index
    %c0_11 = arith.constant 0 : index
    %19 = vector.load %arg3[%c0_10, %c0_11] : memref<32x128xf32, #tpu.memory_space<vmem>>, vector<32x128xf32>
    %20 = arith.mulf %19, %9 : vector<32x128xf32>
    %21 = arith.addf %15, %20 : vector<32x128xf32>
    %22 = arith.negf %21 : vector<32x128xf32>
    %23 = math.exp %22 : vector<32x128xf32>
    %cst_12 = arith.constant 1.000000e+00 : f32
    %24 = vector.broadcast %cst_12 : f32 to vector<32x128xf32>
    %25 = arith.addf %24, %23 : vector<32x128xf32>
    %26 = arith.divf %24, %25 : vector<32x128xf32>
    %c0_13 = arith.constant 0 : index
    %c0_14 = arith.constant 0 : index
    %27 = vector.load %arg4[%c0_13, %c0_14] : memref<32x128xf32, #tpu.memory_space<vmem>>, vector<32x128xf32>
    %28 = arith.mulf %27, %9 : vector<32x128xf32>
    %29 = arith.addf %16, %28 : vector<32x128xf32>
    %30 = arith.negf %29 : vector<32x128xf32>
    %31 = math.exp %30 : vector<32x128xf32>
    %cst_15 = arith.constant 1.000000e+00 : f32
    %32 = vector.broadcast %cst_15 : f32 to vector<32x128xf32>
    %33 = arith.addf %32, %31 : vector<32x128xf32>
    %34 = arith.divf %32, %33 : vector<32x128xf32>
    %35 = arith.mulf %34, %9 : vector<32x128xf32>
    %36 = math.tanh %17 : vector<32x128xf32>
    %37 = arith.mulf %26, %36 : vector<32x128xf32>
    %38 = arith.addf %35, %37 : vector<32x128xf32>
    %c0_16 = arith.constant 0 : index
    %c0_17 = arith.constant 0 : index
    %39 = vector.load %arg5[%c0_16, %c0_17] : memref<32x128xf32, #tpu.memory_space<vmem>>, vector<32x128xf32>
    %40 = arith.mulf %39, %38 : vector<32x128xf32>
    %41 = arith.addf %18, %40 : vector<32x128xf32>
    %42 = arith.negf %41 : vector<32x128xf32>
    %43 = math.exp %42 : vector<32x128xf32>
    %cst_18 = arith.constant 1.000000e+00 : f32
    %44 = vector.broadcast %cst_18 : f32 to vector<32x128xf32>
    %45 = arith.addf %44, %43 : vector<32x128xf32>
    %46 = arith.divf %44, %45 : vector<32x128xf32>
    %47 = math.tanh %38 : vector<32x128xf32>
    %48 = arith.mulf %46, %47 : vector<32x128xf32>
    %c0_19 = arith.constant 0 : index
    %c0_20 = arith.constant 0 : index
    %49 = vector.load %arg7[%c0_19, %c0_20] : memref<32x128xf32, #tpu.memory_space<vmem>>, vector<32x128xf32>
    tpu.vector_store %arg7[%c0_19, %c0_20], %38 {strides = array<i32>} : memref<32x128xf32, #tpu.memory_space<vmem>>, vector<32x128xf32>,
    %50 = vector.shape_cast %48 : vector<32x128xf32> to vector<2x16x128xf32>
    %51 = arith.truncf %50 : vector<2x16x128xf32> to vector<2x16x128xbf16>
    %c0_21 = arith.constant 0 : index
    %c1 = arith.constant 1 : index
    %c0_22 = arith.constant 0 : index
    %52 = vector.load %arg8[%c0_21, %c1, %c0_22] : memref<2x18x128xbf16, #tpu.memory_space<vmem>>, vector<2x16x128xbf16>
    tpu.vector_store %arg8[%c0_21, %c1, %c0_22], %51 {strides = array<i32>} : memref<2x18x128xbf16, #tpu.memory_space<vmem>>, vector<2x16x128xbf16>,
    %53 = arith.truncf %48 : vector<32x128xf32> to vector<32x128xbf16>
    %c0_23 = arith.constant 0 : index
    %c0_24 = arith.constant 0 : index
    %c0_25 = arith.constant 0 : index
    %54 = vector.load %arg6[%c0_23, %c0_24, %c0_25] : memref<1x32x128xbf16, #tpu.memory_space<vmem>>, vector<1x32x128xbf16>
    %55 = vector.shape_cast %54 : vector<1x32x128xbf16> to vector<32x128xbf16>
    %56 = vector.shape_cast %53 : vector<32x128xbf16> to vector<1x32x128xbf16>
    tpu.vector_store %arg6[%c0_23, %c0_24, %c0_25], %56 {strides = array<i32>} : memref<1x32x128xbf16, #tpu.memory_space<vmem>>, vector<1x32x128xbf16>,
    return
  }
  func.func @transform_0(%arg0: i32) -> (i32, i32, i32) {
    %c0_i32 = arith.constant 0 : i32
    %c0_i32_0 = arith.constant 0 : i32
    %c0_i32_1 = arith.constant 0 : i32
    return %arg0, %c0_i32, %c0_i32_0 : i32, i32, i32
  }
  func.func @transform_1(%arg0: i32) -> (i32, i32) {
    %c0_i32 = arith.constant 0 : i32
    %c0_i32_0 = arith.constant 0 : i32
    %c0_i32_1 = arith.constant 0 : i32
    return %c0_i32, %c0_i32_0 : i32, i32
  }
  func.func @transform_2(%arg0: i32) -> (i32, i32) {
    %c0_i32 = arith.constant 0 : i32
    %c0_i32_0 = arith.constant 0 : i32
    %c0_i32_1 = arith.constant 0 : i32
    return %c0_i32, %c0_i32_0 : i32, i32
  }
  func.func @transform_3(%arg0: i32) -> (i32, i32) {
    %c0_i32 = arith.constant 0 : i32
    %c0_i32_0 = arith.constant 0 : i32
    %c0_i32_1 = arith.constant 0 : i32
    return %c0_i32, %c0_i32_0 : i32, i32
  }
  func.func @transform_4(%arg0: i32) -> (i32, i32) {
    %c0_i32 = arith.constant 0 : i32
    %c0_i32_0 = arith.constant 0 : i32
    %c0_i32_1 = arith.constant 0 : i32
    return %c0_i32, %c0_i32_0 : i32, i32
  }
  func.func @transform_5(%arg0: i32) -> (i32, i32, i32) {
    %c0_i32 = arith.constant 0 : i32
    %c0_i32_0 = arith.constant 0 : i32
    %c0_i32_1 = arith.constant 0 : i32
    return %arg0, %c0_i32, %c0_i32_0 : i32, i32, i32
  }
  func.func @transform_6(%arg0: i32) -> (i32, i32) {
    %c0_i32 = arith.constant 0 : i32
    %c0_i32_0 = arith.constant 0 : i32
    %c0_i32_1 = arith.constant 0 : i32
    return %c0_i32, %c0_i32_0 : i32, i32
  }
}

</mosaic_0001>

<bundles_post_ra>
// kernel: tpu_custom_call.1
= control target key start
LH: loop header
LB: loop body
LE: loop exit
PB: predicated region body
PF: predicated region fallthrough
CT: control target
= control target key end

     0   :  { %12 = vsyncpa [#allocation4], 0  ;;  %s3332_s0 = inlined_call_operand.hbm [shape: f32[8,32,512], index: 0, kind: input, shape index: {}]   ;;  %s3333_s1 = inlined_call_operand.hbm [shape: bf16[384,512], index: 1, kind: input, shape index: {}]   ;;  %s3334_s2 = inlined_call_operand.hbm [shape: f32[32,128], index: 2, kind: input, shape index: {}]   ;;  %s3335_s3 = inlined_call_operand.hbm [shape: f32[32,128], index: 3, kind: input, shape index: {}]   ;;  %s3336_s4 = inlined_call_operand.hbm [shape: f32[32,128], index: 4, kind: input, shape index: {}]   ;;  %s3337_s5 = inlined_call_operand.hbm [shape: bf16[8,32,128], index: 5, kind: output, shape index: {0}]   ;;  %s3338_s6 = inlined_call_operand.hbm [shape: f32[32,128], index: 6, kind: output, shape index: {1}]  }
   0x1   :  { %14 = vsyncpa [#allocation4 + $0x1], 0 }
   0x2   :  { %15 = vsyncpa [#allocation7], 0 }
   0x3   :  { %16 = vsyncpa [#allocation10], 0 }
   0x4   :  { %17 = vsyncpa [#allocation5], 0 }
   0x5   :  { %19 = vsyncpa [#allocation5 + $0x1], 0 }
   0x6   :  { %20 = vsyncpa [#allocation14], 0  ;;  %s2787_s21 = smov 0   ;;  %s2789_s22 = smov 0  }
   0x7   :  { %s2791_s23 = smov 0   ;;  %s2793_s24 = smov 0  }
   0x8 LB: > { %s2808_s25 = sadd.s32 4294967295, %s2733_s24   ;;  %s1767_s26 = sadd.s32 4294967294, %s2733_s24   ;;  %s2733_s24 = sphi %s2793_s24, %s3377_s24   ;;  %s2729_s23 = sphi %s2791_s23, %s3376_s23   ;;  %s2725_s22 = sphi %s2789_s22, %s3375_s22   ;;  %s2721_s21 = sphi %s2787_s21, %s3374_s21  }
   0x9   : > { %p46_p0 = scmp.ne.s32.totalorder %s2725_s22, %s2721_s21  ;;  %p47_p1 = scmp.eq.s32.totalorder %s2808_s25, 0 }
   0xa   : > { %p3339_p2 = scmp.eq.s32.totalorder %s2808_s25, 7  ;;  %p160_p3 = scmp.eq.s32.totalorder %s1767_s26, 7 }
   0xb   : > { %p2817_p4 = por %p47_p1, %p46_p0  ;;  %p1768_p5 = scmp.ge.s32.totalorder %s2733_s24, 1 }
   0xc   : > { %p2822_p6 = por %p160_p3, %p46_p0  ;;  %p188_p7 = scmp.lt.s32.totalorder %s2733_s24, 9 }
   0xd   : > { %s199_s7 = sshll.u32 %s3333_s1, 4  ;;  %s2735_s9 = smov [#allocation6]   ;;  %s200_s7 = int_to_ptr.hbm [resolvable:$true] %s199_s7 }
   0xe   : > { %p2831_p9 = pnand %p1768_p5, %p188_p7  ;;  %s201_s10 = sshll.u32 %s2735_s9, 4  ;;  %s202_s10 = int_to_ptr.vmem [resolvable:$true] %s201_s10 }
   0xf   : > { %s227_s14 = sshll.u32 %s3335_s3, 4  ;;  %s2736_s15 = smov 256   ;;  %s228_s14 = int_to_ptr.hbm [resolvable:$true] %s227_s14 }
  0x10   : > { %p2331_p10 = pneg %p2831_p9  ;;  %s2737_s16 = smov 16  }
  0x11   : > { %s2738_s17 = smov [#allocation9]   ;;  %s213_s26 = sshll.u32 %s3334_s2, 4  ;;  %s214_s26 = int_to_ptr.hbm [resolvable:$true] %s213_s26 }
  0x12   : > { %p2839_p11 = pnand %p2331_p10, %p47_p1  ;;  %s229_s18 = sshll.u32 %s2738_s17, 4  ;;  %s230_s18 = int_to_ptr.vmem [resolvable:$true] %s229_s18 }
  0x13   : > { %s2739_s29 = smov 128   ;;  %s2740_s30 = smov 8  }
  0x14   : > { %2334 = dma.hbm_to_vmem [thread:$0]  (!%p2839_p11), %s200_s7, 12288, %s202_s10, [#allocation7], %s2736_s15, %s2736_s15, %s2737_s16  }
  0x15   : > { %2340 = dma.hbm_to_vmem [thread:$0]  (!%p2839_p11), %s228_s14, 512, %s230_s18, [#allocation10], %s2739_s29, %s2739_s29, %s2740_s30  }
  0x16   : > { %s241_s10 = sshll.u32 %s3336_s4, 4  ;;  %s2741_s12 = smov [#allocation8]   ;;  %s242_s10 = int_to_ptr.hbm [resolvable:$true] %s241_s10 }
  0x17   : > { %s215_s13 = sshll.u32 %s2741_s12, 4  ;;  %s2742_s15 = smov [#allocation11]   ;;  %s216_s13 = int_to_ptr.vmem [resolvable:$true] %s215_s13 }
  0x18   : > { %2337 = dma.hbm_to_vmem [thread:$0]  (!%p2839_p11), %s214_s26, 512, %s216_s13, [#allocation7], %s2739_s29, %s2739_s29, %s2740_s30  }
  0x19   : > { %s243_s16 = sshll.u32 %s2742_s15, 4  ;;  %s2861_s14 = sadd.s32 1, %s2733_s24   ;;  %s244_s16 = int_to_ptr.vmem [resolvable:$true] %s243_s16 }
  0x1a   : > { %2343 = dma.hbm_to_vmem [thread:$0]  (!%p2839_p11), %s242_s10, 512, %s244_s16, [#allocation10], %s2739_s29, %s2739_s29, %s2740_s30  }
  0x1b   : > { %s33_s17 = sadd.s32 1, %s2729_s23  ;;  %s30_s18 = ssub.s32 %s2733_s24, %s2861_s14 }
  0x1c   : > { %p40_p12 = scmp.ne.s32.totalorder %s2729_s23, %s2725_s22  ;;  %p31_p13 = scmp.eq.s32.totalorder %s30_s18, 0 }
  0x1d   : > { %p41_p0 = scmp.eq.s32.totalorder %s2733_s24, 0  ;;  %p2356_p5 = scmp.lt.s32.totalorder %s2733_s24, 8 }
  0x1e   : > { %p2871_p3 = por %p3339_p2, %p40_p12  ;;  %s257_s26 = sand.u32 1, %s2729_s23  }
  0x1f   : > { %s2877_s20 = scalar_select %p31_p13, %s2729_s23, %s33_s17  }
  0x20   : > { %p42_p7 = por %p41_p0, %p40_p12  ;;  %s1774_s11 = sshll.u32 %s257_s26, 7 }
  0x21   : > { %s2196_s29 = sshll.u32 %s2733_s24, 7  ;;  %s261_s10 = scalar_lea.vmem [#allocation3], %s1774_s11 }
  0x22   : > { %s266_s9 = scalar_lea.hbm %s3332_s0, %s2196_s29  ;;  %s269_s12 = sshll.u32 %s261_s10, 4  ;;  %s270_s12 = int_to_ptr.vmem [resolvable:$true] %s269_s12 }
  0x23   : > { %s267_s13 = sshll.u32 %s266_s9, 4  ;;  %p2884_p10 = pnand %p2356_p5, %p42_p7  ;;  %s268_s13 = int_to_ptr.hbm [resolvable:$true] %s267_s13 }
  0x24   : > { %s258_s16 = scalar_lea.sflag [#allocation4], %s257_s26  ;;  %s2597_s17 = sshra.s32 %s268_s13, 4  ;;  %s2598_s17 = int_to_ptr.hbm [resolvable:$true] %s2597_s17 }
  0x25   : > { %s2599_s18 = scalar_lea.hbm %s2598_s17, 128  ;;  %p2601_p12 = pneg %p2884_p10 }
  0x26   : > { %p2600_p11 = scmp.ne.s32.totalorder %s2598_s17, %s2599_s18  ;;  %s2604_s30 = scalar_lea.hbm %s3332_s0, 1024 }
  0x27   : > { %p2605_p5 = scmp.lt.s32.totalorder %s2598_s17, %s3332_s0  ;;  %p2606_p7 = scmp.lt.s32.totalorder %s2604_s30, %s2599_s18 }
  0x28   : > { %p2602_p13 = pnand %p2601_p12, %p2600_p11 }
  0x29   : > { %p2607_p2 = por %p2606_p7, %p2605_p5 }
  0x2a   : > { %p2603_p0 = pneg %p2602_p13 }
  0x2c   : > { %p2608_p8 = pnand %p2607_p2, %p2603_p0 }
  0x2e   : > { %2611 = shalt.err (!%p2608_p8)
}
  0x2f   : > { %s2743_s26 = smov 512   ;;  %s2744_s10 = smov 32  }
  0x30   : > { %2347 = dma.hbm_to_vmem [thread:$0]  (!%p2884_p10), %s268_s13, 2048, %s270_s12, %s258_s16, %s2743_s26, %s2743_s26, %s2744_s10  }
  0x31   : > { %281 = sbr.rel (%p2831_p9) target bundleno = 389 (0x185), region = 40  ;;  %s2901_s29 = sand.u32 (!%p2831_p9), 1, %s2725_s22  }
  0x32   : > { %s1778_s11 = sshll.u32 (!%p2831_p9), %s2901_s29, 7  ;;  %s284_s17 = scalar_lea.sflag (!%p2831_p9), [#allocation4], %s2901_s29 }
  0x33   : > { %s2905_s18 = scalar_lea.vmem (!%p2831_p9), [#allocation3], %s1778_s11 }
  0x36   : > { %2700 = dma.done.wait (%p2817_p4), %s284_s17, 2048  }
  0x37   : > { %2702 = vsyncadd (%p2817_p4), %s284_s17, 4294965248 }
  0x38   : > { %2704 = dma.done.wait (%p47_p1), [#allocation7], 12800  }
  0x39   : > { %2706 = vsyncadd (%p47_p1), [#allocation7], 4294954496 }
  0x3a   : > { %2708 = dma.done.wait (%p47_p1), [#allocation10], 1024  }
  0x3b   : > { %2710 = vsyncadd (%p47_p1), [#allocation10], 4294966272  ;;  %s1783_s8 = sshll.u32 %s2901_s29, 4  ;;  %p3346_p2 = scmp.ne.s32.totalorder %s2808_s25, 0 }
  0x3c   : > { %s2920_s12 = scalar_lea.vmem [#allocation12], %s1783_s8 }
  0x3d   : > { %341 = sbr.rel (%p3346_p2) target bundleno = 77 (0x4d), region = 64 }
  0x42   : > { %v2745_v0 = vmov 0   ;;  %v2746_v1 = vmov 0.0  }
  0x43   : > { %342 = vst [vmem:[#allocation2] sm:$0xf] %v2745_v0 }
  0x44   : > { %343 = vst [vmem:[#allocation2 + $0x4] sm:$0xf] %v2745_v0 }
  0x45   : > { %344 = vst [vmem:[#allocation2 + $0x8] sm:$0x1] %v2745_v0 }
  0x46   : > { %345 = vst [vmem:[#allocation2 + $0xc] sm:$0xf] %v2745_v0 }
  0x47   : > { %346 = vst [vmem:[#allocation2 + $0x10] sm:$0xf] %v2745_v0 }
  0x48   : > { %347 = vst [vmem:[#allocation2 + $0x14] sm:$0x1] %v2745_v0 }
  0x49   : > { %348 = vst [vmem:[#allocation13] sm:$0xff] %v2746_v1 }
  0x4a   : > { %349 = vst [vmem:[#allocation13 + $0x8] sm:$0xff] %v2746_v1 }
  0x4b   : > { %350 = vst [vmem:[#allocation13 + $0x10] sm:$0xff] %v2746_v1 }
  0x4c   : > { %351 = vst [vmem:[#allocation13 + $0x18] sm:$0xff] %v2746_v1 }
  0x4d PF: > { %v1907_v2 = vld [vmem:[#allocation6 + $0xe0] sm:$0xf]  ;;  %v2229_v3 = vld [vmem:[#allocation6 + $0xec] sm:$0xf0]  ;;  %v2227_v11 = vld [vmem:[#allocation6 + $0xe4] sm:$0xf] }
  0x4e   : > { %v2035_v4 = vld [vmem:[#allocation6 + $0x1e0] sm:$0xf]  ;;  %v1908_v5 = vor.u32 %v2229_v3, %v1907_v2  ;;  %v2261_v6 = vld [vmem:[#allocation6 + $0x1ec] sm:$0xf0]  ;;  %v1909_v12 = vld [vmem:[#allocation6 + $0xf0] sm:$0xf0] }
  0x4f   : > { %v2163_v7 = vld [vmem:[#allocation6 + $0x2e0] sm:$0xf]  ;;  %v2293_v8 = vld [vmem:[#allocation6 + $0x2ec] sm:$0xf0]  ;;  %v2036_v9 = vor.u32 %v2261_v6, %v2035_v4  ;;  %v1912_v14 = vor.u32 %v2227_v11, %v1909_v12  ;;  %v2223_v22 = vld [vmem:[#allocation6 + $0xc4] sm:$0xf] }
  0x50   : > { %v2164_v10 = vor.u32 %v2293_v8, %v2163_v7  ;;  %v1891_v13 = vld [vmem:[#allocation6 + $0xc0] sm:$0xf]  ;;  %1008 = vmatpush.bf16.msra.mxu0 %v1908_v5  ;;  %v2225_v15 = vld [vmem:[#allocation6 + $0xcc] sm:$0xf0]  ;;  %v1893_v24 = vld [vmem:[#allocation6 + $0xd0] sm:$0xf0] }
  0x51   : > { %v2019_v16 = vld [vmem:[#allocation6 + $0x1c0] sm:$0xf]  ;;  %v2257_v17 = vld [vmem:[#allocation6 + $0x1cc] sm:$0xf0]  ;;  %1027 = vmatpush.bf16.msra.mxu1 %v2036_v9  ;;  %v1892_v18 = vor.u32 %v2225_v15, %v1891_v13  ;;  %1065 = vmatpush.bf16.msra.mxu3 %v1912_v14  ;;  %v1896_v27 = vor.u32 %v2223_v22, %v1893_v24  ;;  %v2219_v33 = vld [vmem:[#allocation6 + $0xa4] sm:$0xf] }
  0x52   : > { %1046 = vmatpush.bf16.msra.mxu2 %v2164_v10  ;;  %v2020_v19 = vor.u32 %v2257_v17, %v2019_v16  ;;  %v2147_v20 = vld [vmem:[#allocation6 + $0x2c0] sm:$0xf]  ;;  %v2289_v21 = vld [vmem:[#allocation6 + $0x2cc] sm:$0xf0]  ;;  %v1877_v34 = vld [vmem:[#allocation6 + $0xb0] sm:$0xf0] }
  0x53   : > { %v2148_v23 = vor.u32 %v2289_v21, %v2147_v20  ;;  %v1875_v25 = vld [vmem:[#allocation6 + $0xa0] sm:$0xf]  ;;  %v2221_v26 = vld [vmem:[#allocation6 + $0xac] sm:$0xf0]  ;;  %v1880_v40 = vor.u32 %v2219_v33, %v1877_v34  ;;  %v2215_v44 = vld [vmem:[#allocation6 + $0x84] sm:$0xf] }
  0x54   : > { %v2003_v28 = vld [vmem:[#allocation6 + $0x1a0] sm:$0xf]  ;;  %v2253_v29 = vld [vmem:[#allocation6 + $0x1ac] sm:$0xf0]  ;;  %1009 = vmatpush.bf16.msra.mxu0 %v1892_v18  ;;  %v1876_v31 = vor.u32 %v2221_v26, %v1875_v25  ;;  %v1861_v45 = vld [vmem:[#allocation6 + $0x90] sm:$0xf0] }
  0x55   : > { %v2131_v30 = vld [vmem:[#allocation6 + $0x2a0] sm:$0xf]  ;;  %v2285_v32 = vld [vmem:[#allocation6 + $0x2ac] sm:$0xf0]  ;;  %1028 = vmatpush.bf16.msra.mxu1 %v2020_v19  ;;  %v2004_v35 = vor.u32 %v2253_v29, %v2003_v28  ;;  %1066 = vmatpush.bf16.msra.mxu3 %v1896_v27  ;;  %v1864_v52 = vor.u32 %v2215_v44, %v1861_v45  ;;  %v2211_v56 = vld [vmem:[#allocation6 + $0x64] sm:$0xf] }
  0x56   : > { %1047 = vmatpush.bf16.msra.mxu2 %v2148_v23  ;;  %v2132_v36 = vor.u32 %v2285_v32, %v2131_v30  ;;  %v1859_v37 = vld [vmem:[#allocation6 + $0x80] sm:$0xf]  ;;  %v2217_v38 = vld [vmem:[#allocation6 + $0x8c] sm:$0xf0]  ;;  %v1845_v57 = vld [vmem:[#allocation6 + $0x70] sm:$0xf0] }
  0x57   : > { %v1987_v39 = vld [vmem:[#allocation6 + $0x180] sm:$0xf]  ;;  %v2249_v41 = vld [vmem:[#allocation6 + $0x18c] sm:$0xf0]  ;;  %v1860_v46 = vor.u32 %v2217_v38, %v1859_v37  ;;  %v1848_v0 = vor.u32 %v2211_v56, %v1845_v57  ;;  %v2207_v4 = vld [vmem:[#allocation6 + $0x44] sm:$0xf] }
  0x58   : > { %v2115_v42 = vld [vmem:[#allocation6 + $0x280] sm:$0xf]  ;;  %v2281_v43 = vld [vmem:[#allocation6 + $0x28c] sm:$0xf0]  ;;  %1010 = vmatpush.bf16.msra.mxu0 %v1876_v31  ;;  %v1988_v47 = vor.u32 %v2249_v41, %v1987_v39  ;;  %v1829_v5 = vld [vmem:[#allocation6 + $0x50] sm:$0xf0] }
  0x59   : > { %1029 = vmatpush.bf16.msra.mxu1 %v2004_v35  ;;  %v2116_v48 = vor.u32 %v2281_v43, %v2115_v42  ;;  %v1843_v49 = vld [vmem:[#allocation6 + $0x60] sm:$0xf]  ;;  %v2213_v50 = vld [vmem:[#allocation6 + $0x6c] sm:$0xf0]  ;;  %1067 = vmatpush.bf16.msra.mxu3 %v1880_v40  ;;  %v1832_v15 = vor.u32 %v2207_v4, %v1829_v5  ;;  %v2203_v16 = vld [vmem:[#allocation6 + $0x24] sm:$0xf] }
  0x5a   : > { %1048 = vmatpush.bf16.msra.mxu2 %v2132_v36  ;;  %v1971_v51 = vld [vmem:[#allocation6 + $0x160] sm:$0xf]  ;;  %v2245_v53 = vld [vmem:[#allocation6 + $0x16c] sm:$0xf0]  ;;  %v1844_v58 = vor.u32 %v2213_v50, %v1843_v49  ;;  %v2924_v17 = vld [vmem:[#allocation2] sm:$0xff]  ;;  %vm403_vm0 = vcmask 1046528  }
  0x5b   : > { %v2099_v54 = vld [vmem:[#allocation6 + $0x260] sm:$0xf]  ;;  %v2277_v55 = vld [vmem:[#allocation6 + $0x26c] sm:$0xf0]  ;;  %v1972_v59 = vor.u32 %v2245_v53, %v1971_v51  ;;  %v1813_v19 = vld [vmem:[#allocation6 + $0x30] sm:$0xf0] }
  0x5c   : > { %1011 = vmatpush.bf16.msra.mxu0 %v1860_v46  ;;  %v2100_v60 = vor.u32 %v2277_v55, %v2099_v54  ;;  %v1827_v61 = vld [vmem:[#allocation6 + $0x40] sm:$0xf]  ;;  %v2209_v62 = vld [vmem:[#allocation6 + $0x4c] sm:$0xf0]  ;;  %v380_v26 = vshll.u32 %v2924_v17, 16  ;;  %v378_v32 = vshrl.u32 %v2924_v17, 16  ;;  %v1816_v33 = vor.u32 %v2203_v16, %v1813_v19 }
  0x5d   : > { %1030 = vmatpush.bf16.msra.mxu1 %v1988_v47  ;;  %v1955_v63 = vld [vmem:[#allocation6 + $0x140] sm:$0xf]  ;;  %1068 = vmatpush.bf16.msra.mxu3 %v1864_v52  ;;  %v2241_v1 = vld [vmem:[#allocation6 + $0x14c] sm:$0xf0]  ;;  %v1828_v6 = vor.u32 %v2209_v62, %v1827_v61  ;;  %v2199_v34 = vld [vmem:[#allocation6 + $0x4] sm:$0xf] }
  0x5e   : > { %1049 = vmatpush.bf16.msra.mxu2 %v2116_v48  ;;  %v2083_v2 = vld [vmem:[#allocation6 + $0x240] sm:$0xf]  ;;  %v2273_v3 = vld [vmem:[#allocation6 + $0x24c] sm:$0xf0]  ;;  %v1956_v10 = vor.u32 %v2241_v1, %v1955_v63  ;;  %v1797_v35 = vld [vmem:[#allocation6 + $0x10] sm:$0xf0] }
  0x5f   : > { %v1811_v7 = vld [vmem:[#allocation6 + $0x20] sm:$0xf]  ;;  %v2205_v8 = vld [vmem:[#allocation6 + $0x2c] sm:$0xf0]  ;;  %v2084_v11 = vor.u32 %v2273_v3, %v2083_v2  ;;  %v382_v36 = vrot.slane %v380_v26, 1  ;;  %v404_v47 = vrot.slane %v2924_v17, 1  ;;  %v1800_v49 = vor.u32 %v2199_v34, %v1797_v35 }
  0x60   : > { %1012 = vmatpush.bf16.msra.mxu0 %v1844_v58  ;;  %v1939_v9 = vld [vmem:[#allocation6 + $0x120] sm:$0xf]  ;;  %v2237_v12 = vld [vmem:[#allocation6 + $0x12c] sm:$0xf0]  ;;  %v1812_v23 = vor.u32 %v2205_v8, %v1811_v7  ;;  %v2259_v38 = vld [vmem:[#allocation6 + $0x1e4] sm:$0xf] }
  0x61   : > { %1031 = vmatpush.bf16.msra.mxu1 %v1972_v59  ;;  %v2067_v13 = vld [vmem:[#allocation6 + $0x220] sm:$0xf]  ;;  %v2269_v14 = vld [vmem:[#allocation6 + $0x22c] sm:$0xf0]  ;;  %1069 = vmatpush.bf16.msra.mxu3 %v1848_v0  ;;  %v1940_v27 = vor.u32 %v2237_v12, %v1939_v9  ;;  %v2037_v39 = vld [vmem:[#allocation6 + $0x1f0] sm:$0xf0]  ;;  %v383_v45 = vor.u32 %v382_v36, %v378_v32 }
  0x62   : > { %1050 = vmatpush.bf16.msra.mxu2 %v2100_v60  ;;  %v354_v18 = vld [vmem:[#allocation2 + $0x8] sm:$0x1]  ;;  %v1795_v20 = vld [vmem:[#allocation6] sm:$0xf]  ;;  %v2068_v28 = vor.u32 %v2269_v14, %v2067_v13  ;;  %vm376_vm1 = vsmask.f32 7424  ;;  %v2040_v50 = vor.u32 %v2259_v38, %v2037_v39 }
  0x63   : > { %v2201_v21 = vld [vmem:[#allocation6 + $0xc] sm:$0xf0]  ;;  %v372_v22 = vunpack.c.l.b16 %v354_v18  ;;  %v1923_v24 = vld [vmem:[#allocation6 + $0x100] sm:$0xf]  ;;  %v1915_v43 = vld [vmem:[#allocation6 + $0xe8] sm:$0xf] }
  0x64   : > { %1013 = vmatpush.bf16.msra.mxu0 %v1828_v6  ;;  %v2233_v25 = vld [vmem:[#allocation6 + $0x10c] sm:$0xf0]  ;;  %v2051_v29 = vld [vmem:[#allocation6 + $0x200] sm:$0xf]  ;;  %v1796_v40 = vor.u32 %v2201_v21, %v1795_v20  ;;  %v2230_v44 = vld [vmem:[#allocation6 + $0xf4] sm:$0xf0] }
  0x65   : > { %1032 = vmatpush.bf16.msra.mxu1 %v1956_v10  ;;  %v2265_v30 = vld [vmem:[#allocation6 + $0x20c] sm:$0xf0]  ;;  %v374_v31 = vpack.c.b16 %v372_v22, %v372_v22  ;;  %1070 = vmatpush.bf16.msra.mxu3 %v1832_v15  ;;  %v1924_v41 = vor.u32 %v2233_v25, %v1923_v24  ;;  %v2043_v51 = vld [vmem:[#allocation6 + $0x1e8] sm:$0xf]  ;;  %v2291_v52 = vld [vmem:[#allocation6 + $0x2e4] sm:$0xf]  ;;  %v1916_v54 = vor.u32 %v2230_v44, %v1915_v43 }
  0x66   : > { %1051 = vmatpush.bf16.msra.mxu2 %v2084_v11  ;;  %v2052_v42 = vor.u32 %v2265_v30, %v2051_v29  ;;  %v2165_v53 = vld [vmem:[#allocation6 + $0x2f0] sm:$0xf0]  ;;  %v2262_v55 = vld [vmem:[#allocation6 + $0x1f4] sm:$0xf0]  ;;  %v2255_v56 = vld [vmem:[#allocation6 + $0x1c4] sm:$0xf] }
  0x67   : > { %v385_v37 = vshll.u32 %v374_v31, 16  ;;  %v405_v48 = vrot.slane %v374_v31, 1  ;;  %v2021_v57 = vld [vmem:[#allocation6 + $0x1d0] sm:$0xf0]  ;;  %v1899_v58 = vld [vmem:[#allocation6 + $0xc8] sm:$0xf]  ;;  %v2168_v62 = vor.u32 %v2291_v52, %v2165_v53  ;;  %v2044_v1 = vor.u32 %v2262_v55, %v2043_v51 }
  0x68   : > { %1014 = vmatpush.bf16.msra.mxu0 %v1812_v23  ;;  %v2226_v59 = vld [vmem:[#allocation6 + $0xd4] sm:$0xf0]  ;;  %v2027_v63 = vld [vmem:[#allocation6 + $0x1c8] sm:$0xf]  ;;  %v2024_v2 = vor.u32 %v2255_v56, %v2021_v57  ;;  %v2287_v4 = vld [vmem:[#allocation6 + $0x2c4] sm:$0xf] }
  0x69   : > { %1033 = vmatpush.bf16.msra.mxu1 %v1940_v27  ;;  %v387_v46 = vrot.slane %v385_v37, 1  ;;  %1071 = vmatpush.bf16.msra.mxu3 %v1816_v33  ;;  %v2933_v61 = vsel %vm403_vm0, %v404_v47, %v405_v48  ;;  %v2935_v0 = vld [vmem:[#allocation2 + $0xc] sm:$0xff]  ;;  %v1900_v6 = vor.u32 %v2226_v59, %v1899_v58  ;;  %v2251_v7 = vld [vmem:[#allocation6 + $0x1a4] sm:$0xf]  ;;  %v357_v9 = vld [vmem:[#allocation2 + $0x14] sm:$0x1] }
  0x6a   : > { %1052 = vmatpush.bf16.msra.mxu2 %v2068_v28  ;;  %v2258_v3 = vld [vmem:[#allocation6 + $0x1d4] sm:$0xf0]  ;;  %v2149_v5 = vld [vmem:[#allocation6 + $0x2d0] sm:$0xf0]  ;;  %v1883_v10 = vld [vmem:[#allocation6 + $0xa8] sm:$0xf]  ;;  %v373_v12 = vunpack.c.l.b16 %v357_v9 }
  0x6b   : > { %v2930_v60 = vsel %vm376_vm1, %v383_v45, %v387_v46  ;;  %v2005_v8 = vld [vmem:[#allocation6 + $0x1b0] sm:$0xf0]  ;;  %v2222_v11 = vld [vmem:[#allocation6 + $0xb4] sm:$0xf0]  ;;  %v2152_v13 = vor.u32 %v2287_v4, %v2149_v5  ;;  %v392_v14 = vshll.u32 %v2935_v0, 16  ;;  %v2028_v15 = vor.u32 %v2258_v3, %v2027_v63  ;;  %s2747_s27 = smov [#allocation13]  }
  0x6c   : > { %1015 = vmatpush.bf16.msra.mxu0 %v1796_v40  ;;  %v2008_v16 = vor.u32 %v2251_v7, %v2005_v8  ;;  %v2011_v18 = vld [vmem:[#allocation6 + $0x1a8] sm:$0xf]  ;;  %v2283_v19 = vld [vmem:[#allocation6 + $0x2a4] sm:$0xf]  ;;  %v2133_v20 = vld [vmem:[#allocation6 + $0x2b0] sm:$0xf0]  ;;  %v375_v21 = vpack.c.b16 %v373_v12, %v373_v12  ;;  %v1884_v22 = vor.u32 %v2222_v11, %v1883_v10 }
  0x6d   : > { %1034 = vmatpush.bf16.msra.mxu1 %v1924_v41  ;;  %1072 = vmatpush.bf16.msra.mxu3 %v1800_v49  ;;  %v2254_v23 = vld [vmem:[#allocation6 + $0x1b4] sm:$0xf0]  ;;  %v2247_v24 = vld [vmem:[#allocation6 + $0x184] sm:$0xf]  ;;  %v1989_v25 = vld [vmem:[#allocation6 + $0x190] sm:$0xf0]  ;;  %v2136_v29 = vor.u32 %v2283_v19, %v2133_v20 }
  0x6e   : > { %1053 = vmatpush.bf16.msra.mxu2 %v2052_v42  ;;  %v1867_v26 = vld [vmem:[#allocation6 + $0x88] sm:$0xf]  ;;  %v2218_v27 = vld [vmem:[#allocation6 + $0x94] sm:$0xf0]  ;;  %v390_v28 = vshrl.u32 %v2935_v0, 16  ;;  %v394_v32 = vrot.slane %v392_v14, 1  ;;  %v2012_v34 = vor.u32 %v2254_v23, %v2011_v18  ;;  %v1992_v35 = vor.u32 %v2247_v24, %v1989_v25 }
  0x6f   : > { %1016 = vmatmul.bf16.vlgmr.msra.gmra.mxu0 %v2924_v17  ;;  %v2279_v30 = vld [vmem:[#allocation6 + $0x284] sm:$0xf]  ;;  %v2117_v31 = vld [vmem:[#allocation6 + $0x290] sm:$0xf0]  ;;  %v397_v33 = vshll.u32 %v375_v21, 16  ;;  %v1868_v37 = vor.u32 %v2218_v27, %v1867_v26  ;;  %v407_v46 = vrot.slane %v2935_v0, 1 }
  0x70   : > { %1084 = vmatpush.bf16.msrb.mxu0 %v2040_v50  ;;  %1035 = vmatmul.bf16.vlgmr.msra.gmra.mxu1 %v2930_v60  ;;  %v1995_v36 = vld [vmem:[#allocation6 + $0x188] sm:$0xf]  ;;  %v2250_v38 = vld [vmem:[#allocation6 + $0x194] sm:$0xf0]  ;;  %v2243_v39 = vld [vmem:[#allocation6 + $0x164] sm:$0xf]  ;;  %v2120_v41 = vor.u32 %v2279_v30, %v2117_v31  ;;  %v395_v44 = vor.u32 %v394_v32, %v390_v28 }
  0x71   : > { %1054 = vmatmul.bf16.vlgmr.msra.gmra.mxu2 %v2933_v61  ;;  %1073 = vmatmul.bf16.vlgmr.msra.gmra.mxu3 %v2924_v17  ;;  %v1973_v40 = vld [vmem:[#allocation6 + $0x170] sm:$0xf0]  ;;  %v1851_v42 = vld [vmem:[#allocation6 + $0x68] sm:$0xf]  ;;  %v2214_v43 = vld [vmem:[#allocation6 + $0x74] sm:$0xf0]  ;;  %v1996_v48 = vor.u32 %v2250_v38, %v1995_v36 }
  0x72   : > { %1122 = vmatpush.bf16.msrb.mxu2 %v1916_v54  ;;  %1103 = vmatpush.bf16.msrb.mxu1 %v2168_v62  ;;  %v399_v45 = vrot.slane %v397_v33, 1  ;;  %v408_v47 = vrot.slane %v375_v21, 1  ;;  %v1976_v49 = vor.u32 %v2243_v39, %v1973_v40  ;;  %v1979_v50 = vld [vmem:[#allocation6 + $0x168] sm:$0xf]  ;;  %v2275_v51 = vld [vmem:[#allocation6 + $0x264] sm:$0xf]  ;;  %v1852_v53 = vor.u32 %v2214_v43, %v1851_v42 }
  0x73   : > { %1141 = vmatpush.bf16.msrb.mxu3 %v2044_v1  ;;  %v2101_v52 = vld [vmem:[#allocation6 + $0x270] sm:$0xf0]  ;;  %v2246_v54 = vld [vmem:[#allocation6 + $0x174] sm:$0xf0]  ;;  %v2239_v55 = vld [vmem:[#allocation6 + $0x144] sm:$0xf] }
  0x74   : > { %1085 = vmatpush.bf16.msrb.mxu0 %v2024_v2  ;;  %v1957_v56 = vld [vmem:[#allocation6 + $0x150] sm:$0xf0]  ;;  %v1835_v57 = vld [vmem:[#allocation6 + $0x48] sm:$0xf]  ;;  %v2210_v58 = vld [vmem:[#allocation6 + $0x54] sm:$0xf0]  ;;  %v2945_v59 = vsel %vm376_vm1, %v395_v44, %v399_v45  ;;  %v2948_v62 = vsel %vm403_vm0, %v407_v46, %v408_v47  ;;  %v2104_v63 = vor.u32 %v2275_v51, %v2101_v52  ;;  %v1980_v1 = vor.u32 %v2246_v54, %v1979_v50 }
  0x75   : > { %v1960_v2 = vor.u32 %v2239_v55, %v1957_v56  ;;  %v1963_v3 = vld [vmem:[#allocation6 + $0x148] sm:$0xf]  ;;  %v2271_v4 = vld [vmem:[#allocation6 + $0x244] sm:$0xf]  ;;  %v2085_v5 = vld [vmem:[#allocation6 + $0x250] sm:$0xf0] }
  0x76   : > { %1123 = vmatpush.bf16.msrb.mxu2 %v1900_v6  ;;  %1104 = vmatpush.bf16.msrb.mxu1 %v2152_v13  ;;  %v1836_v6 = vor.u32 %v2210_v58, %v1835_v57  ;;  %v2242_v7 = vld [vmem:[#allocation6 + $0x154] sm:$0xf0]  ;;  %v2235_v8 = vld [vmem:[#allocation6 + $0x124] sm:$0xf]  ;;  %v1941_v9 = vld [vmem:[#allocation6 + $0x130] sm:$0xf0]  ;;  %v2088_v12 = vor.u32 %v2271_v4, %v2085_v5 }
  0x77   : > { %1142 = vmatpush.bf16.msrb.mxu3 %v2028_v15  ;;  %v1819_v10 = vld [vmem:[#allocation6 + $0x28] sm:$0xf]  ;;  %v2206_v11 = vld [vmem:[#allocation6 + $0x34] sm:$0xf0]  ;;  %v1964_v14 = vor.u32 %v2242_v7, %v1963_v3  ;;  %v1944_v15 = vor.u32 %v2235_v8, %v1941_v9  ;;  %v2267_v18 = vld [vmem:[#allocation6 + $0x224] sm:$0xf] }
  0x78   : > { %1086 = vmatpush.bf16.msrb.mxu0 %v2008_v16  ;;  %v1947_v13 = vld [vmem:[#allocation6 + $0x128] sm:$0xf]  ;;  %v2238_v16 = vld [vmem:[#allocation6 + $0x134] sm:$0xf0]  ;;  %v2069_v19 = vld [vmem:[#allocation6 + $0x230] sm:$0xf0]  ;;  %v1820_v20 = vor.u32 %v2206_v11, %v1819_v10 }
  0x79   : > { %v2231_v21 = vld [vmem:[#allocation6 + $0x104] sm:$0xf]  ;;  %v1803_v23 = vld [vmem:[#allocation6 + $0x8] sm:$0xf]  ;;  %v2202_v24 = vld [vmem:[#allocation6 + $0x14] sm:$0xf0]  ;;  %v2072_v27 = vor.u32 %v2267_v18, %v2069_v19  ;;  %v1948_v30 = vor.u32 %v2238_v16, %v1947_v13 }
  0x7a   : > { %1124 = vmatpush.bf16.msrb.mxu2 %v1884_v22  ;;  %1105 = vmatpush.bf16.msrb.mxu1 %v2136_v29  ;;  %v1925_v22 = vld [vmem:[#allocation6 + $0x110] sm:$0xf0]  ;;  %v2171_v25 = vld [vmem:[#allocation6 + $0x2e8] sm:$0xf]  ;;  %v2294_v26 = vld [vmem:[#allocation6 + $0x2f4] sm:$0xf0] }
  0x7b   : > { %1143 = vmatpush.bf16.msrb.mxu3 %v2012_v34  ;;  %v2260_v28 = vld [vmem:[#allocation6 + $0x1ec] sm:$0xf]  ;;  %v2045_v29 = vld [vmem:[#allocation6 + $0x1f8] sm:$0xf0]  ;;  %v1928_v31 = vor.u32 %v2231_v21, %v1925_v22  ;;  %v1931_v32 = vld [vmem:[#allocation6 + $0x108] sm:$0xf] }
  0x7c   : > { %1087 = vmatpush.bf16.msrb.mxu0 %v1992_v35  ;;  %v2263_v33 = vld [vmem:[#allocation6 + $0x204] sm:$0xf]  ;;  %v2053_v34 = vld [vmem:[#allocation6 + $0x210] sm:$0xf0]  ;;  %v1804_v35 = vor.u32 %v2202_v24, %v1803_v23  ;;  %v2234_v36 = vld [vmem:[#allocation6 + $0x114] sm:$0xf0]  ;;  %v2048_v40 = vor.u32 %v2260_v28, %v2045_v29 }
  0x7d   : > { %v2228_v38 = vld [vmem:[#allocation6 + $0xec] sm:$0xf]  ;;  %v1917_v39 = vld [vmem:[#allocation6 + $0xf8] sm:$0xf0]  ;;  %v2056_v43 = vor.u32 %v2263_v33, %v2053_v34  ;;  %v1932_v44 = vor.u32 %v2234_v36, %v1931_v32  ;;  %v2155_v45 = vld [vmem:[#allocation6 + $0x2c8] sm:$0xf] }
  0x7e   : > { %1125 = vmatpush.bf16.msrb.mxu2 %v1868_v37  ;;  %1106 = vmatpush.bf16.msrb.mxu1 %v2120_v41  ;;  %v2172_v37 = vor.u32 %v2294_v26, %v2171_v25  ;;  %v2292_v41 = vld [vmem:[#allocation6 + $0x2ec] sm:$0xf]  ;;  %v2173_v42 = vld [vmem:[#allocation6 + $0x2f8] sm:$0xf0]  ;;  %v2290_v46 = vld [vmem:[#allocation6 + $0x2d4] sm:$0xf0]  ;;  %v1920_v47 = vor.u32 %v2228_v38, %v1917_v39 }
  0x7f   : > { %1144 = vmatpush.bf16.msrb.mxu3 %v1996_v48  ;;  %1021 = vmatmul.bf16.gmra.mxu0 %v2935_v0  ;;  %v2256_v48 = vld [vmem:[#allocation6 + $0x1cc] sm:$0xf]  ;;  %v2029_v50 = vld [vmem:[#allocation6 + $0x1d8] sm:$0xf0]  ;;  %v2156_v55 = vor.u32 %v2290_v46, %v2155_v45  ;;  %v2139_v57 = vld [vmem:[#allocation6 + $0x2a8] sm:$0xf] }
  0x80   : > { %1088 = vmatpush.bf16.msrb.mxu0 %v1976_v49  ;;  %1040 = vmatmul.bf16.gmra.mxu1 %v2945_v59  ;;  %v2176_v49 = vor.u32 %v2292_v41, %v2173_v42  ;;  %v2224_v51 = vld [vmem:[#allocation6 + $0xcc] sm:$0xf]  ;;  %v1901_v52 = vld [vmem:[#allocation6 + $0xd8] sm:$0xf0]  ;;  %v2032_v56 = vor.u32 %v2256_v48, %v2029_v50  ;;  %v2286_v58 = vld [vmem:[#allocation6 + $0x2b4] sm:$0xf0] }
  0x81   : > { %1059 = vmatmul.bf16.gmra.mxu2 %v2948_v62  ;;  %1078 = vmatmul.bf16.gmra.mxu3 %v2935_v0  ;;  %v2157_v54 = vld [vmem:[#allocation6 + $0x2d8] sm:$0xf0]  ;;  %v2220_v4 = vld [vmem:[#allocation6 + $0xac] sm:$0xf]  ;;  %v2140_v8 = vor.u32 %v2286_v58, %v2139_v57  ;;  %v2123_v10 = vld [vmem:[#allocation6 + $0x288] sm:$0xf] }
  0x82   : > { %1126 = vmatpush.bf16.msrb.mxu2 %v1852_v53  ;;  %1107 = vmatpush.bf16.msrb.mxu1 %v2104_v63  ;;  %v2288_v53 = vld [vmem:[#allocation6 + $0x2cc] sm:$0xf]  ;;  %v1904_v63 = vor.u32 %v2224_v51, %v1901_v52  ;;  %v2013_v3 = vld [vmem:[#allocation6 + $0x1b8] sm:$0xf0]  ;;  %v2282_v11 = vld [vmem:[#allocation6 + $0x294] sm:$0xf0] }
  0x83   : > { %1145 = vmatpush.bf16.msrb.mxu3 %v1980_v1  ;;  %v2252_v1 = vld [vmem:[#allocation6 + $0x1ac] sm:$0xf]  ;;  %v1885_v5 = vld [vmem:[#allocation6 + $0xb8] sm:$0xf0]  ;;  %v2124_v21 = vor.u32 %v2282_v11, %v2123_v10  ;;  %v2107_v23 = vld [vmem:[#allocation6 + $0x268] sm:$0xf] }
  0x84   : > { %1089 = vmatpush.bf16.msrb.mxu0 %v1960_v2  ;;  %v2160_v2 = vor.u32 %v2288_v53, %v2157_v54  ;;  %v2141_v7 = vld [vmem:[#allocation6 + $0x2b8] sm:$0xf0]  ;;  %v2016_v9 = vor.u32 %v2252_v1, %v2013_v3  ;;  %v2248_v13 = vld [vmem:[#allocation6 + $0x18c] sm:$0xf]  ;;  %v2278_v24 = vld [vmem:[#allocation6 + $0x274] sm:$0xf0] }
  0x85   : > { %v2216_v16 = vld [vmem:[#allocation6 + $0x8c] sm:$0xf]  ;;  %v1869_v18 = vld [vmem:[#allocation6 + $0x98] sm:$0xf0]  ;;  %v2108_v33 = vor.u32 %v2278_v24, %v2107_v23  ;;  %v2274_v36 = vld [vmem:[#allocation6 + $0x254] sm:$0xf0] }
  0x86   : > { %1127 = vmatpush.bf16.msrb.mxu2 %v1836_v6  ;;  %1108 = vmatpush.bf16.msrb.mxu1 %v2088_v12  ;;  %v2284_v6 = vld [vmem:[#allocation6 + $0x2ac] sm:$0xf]  ;;  %v1888_v12 = vor.u32 %v2220_v4, %v1885_v5  ;;  %v1872_v25 = vor.u32 %v2216_v16, %v1869_v18  ;;  %v1981_v28 = vld [vmem:[#allocation6 + $0x178] sm:$0xf0]  ;;  %v2270_v48 = vld [vmem:[#allocation6 + $0x234] sm:$0xf0] }
  0x87   : > { %1146 = vmatpush.bf16.msrb.mxu3 %v1964_v14  ;;  %v2144_v14 = vor.u32 %v2284_v6, %v2141_v7  ;;  %v2280_v19 = vld [vmem:[#allocation6 + $0x28c] sm:$0xf]  ;;  %v2109_v32 = vld [vmem:[#allocation6 + $0x278] sm:$0xf0]  ;;  %v2266_v1 = vld [vmem:[#allocation6 + $0x214] sm:$0xf0] }
  0x88   : > { %1090 = vmatpush.bf16.msrb.mxu0 %v1944_v15  ;;  %v1997_v15 = vld [vmem:[#allocation6 + $0x198] sm:$0xf0]  ;;  %v2244_v26 = vld [vmem:[#allocation6 + $0x16c] sm:$0xf]  ;;  %s3237_s13 = sshll.u32 %s2747_s27, 4  ;;  %s1643_s30 = sshll.u32 %s3338_s6, 4  ;;  %s1642_s13 = int_to_ptr.vmem [resolvable:$true] %s3237_s13  ;;  %s1644_s30 = int_to_ptr.hbm [resolvable:$true] %s1643_s30 }
  0x89   : > { %v2000_v22 = vor.u32 %v2248_v13, %v1997_v15  ;;  %v2212_v29 = vld [vmem:[#allocation6 + $0x6c] sm:$0xf]  ;;  %v1984_v34 = vor.u32 %v2244_v26, %v1981_v28  ;;  %v1837_v42 = vld [vmem:[#allocation6 + $0x58] sm:$0xf0]  ;;  %s2748_s7 = smov 128   ;;  %s2749_s9 = smov 8  }
  0x8a   : > { %1128 = vmatpush.bf16.msrb.mxu2 %v1820_v20  ;;  %1109 = vmatpush.bf16.msrb.mxu1 %v2072_v27  ;;  %v2125_v20 = vld [vmem:[#allocation6 + $0x298] sm:$0xf0]  ;;  %v2240_v38 = vld [vmem:[#allocation6 + $0x14c] sm:$0xf]  ;;  %p3365_p1 = scmp.eq.s32.totalorder %s2808_s25, 7  ;;  %s2295_s26 = sshll.u32 %s2808_s25, 4 }
  0x8b   : > { %1147 = vmatpush.bf16.msrb.mxu3 %v1948_v30  ;;  %v2128_v27 = vor.u32 %v2280_v19, %v2125_v20  ;;  %v1853_v30 = vld [vmem:[#allocation6 + $0x78] sm:$0xf0]  ;;  %v2208_v41 = vld [vmem:[#allocation6 + $0x4c] sm:$0xf]  ;;  %s1626_s17 = scalar_lea.hbm %s3337_s5, %s2295_s26  ;;  %s1615_s27 = scalar_lea.sflag [#allocation5], %s2901_s29 }
  0x8c   : > { %1091 = vmatpush.bf16.msrb.mxu0 %v1928_v31  ;;  %v2276_v31 = vld [vmem:[#allocation6 + $0x26c] sm:$0xf]  ;;  %v1949_v52 = vld [vmem:[#allocation6 + $0x138] sm:$0xf0]  ;;  %s1629_s8 = sshll.u32 %s1626_s17, 4  ;;  %s1630_s8 = int_to_ptr.hbm [resolvable:$true] %s1629_s8 }
  0x8d   : > { %v2112_v39 = vor.u32 %v2276_v31, %v2109_v32  ;;  %v2236_v50 = vld [vmem:[#allocation6 + $0x12c] sm:$0xf]  ;;  %v1821_v54 = vld [vmem:[#allocation6 + $0x38] sm:$0xf0] }
  0x8e   : > { %1129 = vmatpush.bf16.msrb.mxu2 %v1804_v35  ;;  %1110 = vmatpush.bf16.msrb.mxu1 %v2056_v43  ;;  %v2091_v35 = vld [vmem:[#allocation6 + $0x248] sm:$0xf]  ;;  %v2272_v43 = vld [vmem:[#allocation6 + $0x24c] sm:$0xf]  ;;  %v1952_v58 = vor.u32 %v2236_v50, %v1949_v52  ;;  %v1933_v5 = vld [vmem:[#allocation6 + $0x118] sm:$0xf0] }
  0x8f   : > { %1148 = vmatpush.bf16.msrb.mxu3 %v1932_v44  ;;  %1092 = vmatmul.bf16.vlgmr.msrb.gmra.mxu0 %v2930_v60  ;;  %v2093_v44 = vld [vmem:[#allocation6 + $0x258] sm:$0xf0]  ;;  %v2092_v45 = vor.u32 %v2274_v36, %v2091_v35  ;;  %v2204_v53 = vld [vmem:[#allocation6 + $0x2c] sm:$0xf] }
  0x90   : > { %1160 = vmatpush.bf16.msra.mxu0 %v2172_v37  ;;  %v1856_v37 = vor.u32 %v2212_v29, %v1853_v30  ;;  %v2096_v51 = vor.u32 %v2272_v43, %v2093_v44  ;;  %v2232_v3 = vld [vmem:[#allocation6 + $0x10c] sm:$0xf]  ;;  %v1805_v7 = vld [vmem:[#allocation6 + $0x18] sm:$0xf0]  ;;  %v420_v30 = vld [vmem:[%s2905_s18 + $0x20] sm:$0xff] }
  0x91   : > { %1130 = vmatmul.bf16.vlgmr.msrb.gmra.mxu2 %v2924_v17  ;;  %1111 = vmatmul.bf16.vlgmr.msrb.gmra.mxu1 %v2933_v61  ;;  %v2200_v6 = vld [vmem:[#allocation6 + $0xc] sm:$0xf]  ;;  %v1936_v11 = vor.u32 %v2232_v3, %v1933_v5  ;;  %v424_v43 = vld [vmem:[%s2905_s18 + $0x40] sm:$0xff]  ;;  %v1254_v44 = vld [vmem:[#allocation8 + $0x10] sm:$0xff] }
  0x92   : > { %1198 = vmatpush.bf16.msra.mxu2 %v2048_v40  ;;  %1179 = vmatpush.bf16.msra.mxu1 %v1920_v47  ;;  %v1965_v40 = vld [vmem:[#allocation6 + $0x158] sm:$0xf0]  ;;  %v2075_v47 = vld [vmem:[#allocation6 + $0x228] sm:$0xf] }
  0x93   : > { %1217 = vmatpush.bf16.msra.mxu3 %v2176_v49  ;;  %v1968_v46 = vor.u32 %v2240_v38, %v1965_v40  ;;  %v1840_v49 = vor.u32 %v2208_v41, %v1837_v42  ;;  %v2076_v57 = vor.u32 %v2270_v48, %v2075_v47  ;;  %v2974_v29 = vld [vmem:[#allocation13 + $0x8] sm:$0xff]  ;;  %v2980_v42 = vld [vmem:[#allocation13 + $0x10] sm:$0xff] }
  0x94   : > { %1149 = vmatmul.bf16.vlgmr.msrb.gmra.mxu3 %v2930_v60  ;;  %1161 = vmatpush.bf16.msra.mxu0 %v2156_v55  ;;  %v2268_v55 = vld [vmem:[#allocation6 + $0x22c] sm:$0xf]  ;;  %v1258_v52 = vmul.f32 %v1254_v44, %v2980_v42 }
  0x95   : > { %v1253_v31 = vld [vmem:[#allocation8 + $0x8] sm:$0xff] }
  0x96   : > { %1199 = vmatpush.bf16.msra.mxu2 %v2032_v56  ;;  %1180 = vmatpush.bf16.msra.mxu1 %v1904_v63  ;;  %v2077_v56 = vld [vmem:[#allocation6 + $0x238] sm:$0xf0]  ;;  %v2059_v63 = vld [vmem:[#allocation6 + $0x208] sm:$0xf] }
  0x97   : > { %1218 = vmatpush.bf16.msra.mxu3 %v2160_v2  ;;  %v1824_v2 = vor.u32 %v2204_v53, %v1821_v54  ;;  %v2080_v4 = vor.u32 %v2268_v55, %v2077_v56  ;;  %v2060_v10 = vor.u32 %v2266_v1, %v2059_v63  ;;  %v417_v55 = vld [vmem:[%s2905_s18 + $0x8] sm:$0xff] }
  0x98   : > { %1162 = vmatpush.bf16.msra.mxu0 %v2140_v8  ;;  %v2264_v8 = vld [vmem:[#allocation6 + $0x20c] sm:$0xf] }
  0x9a   : > { %1200 = vmatpush.bf16.msra.mxu2 %v2016_v9  ;;  %1181 = vmatpush.bf16.msra.mxu1 %v1888_v12  ;;  %v2061_v9 = vld [vmem:[#allocation6 + $0x218] sm:$0xf0]  ;;  %v1808_v12 = vor.u32 %v2200_v6, %v1805_v7  ;;  %v428_v6 = vld [vmem:[%s2905_s18 + $0x60] sm:$0xff] }
  0x9b   : > { %1219 = vmatpush.bf16.msra.mxu3 %v2144_v14  ;;  %v2064_v13 = vor.u32 %v2264_v8, %v2061_v9 }
  0x9c   : > { %1163 = vmatpush.bf16.msra.mxu0 %v2124_v21 }
  0x9e   : > { %1201 = vmatpush.bf16.msra.mxu2 %v2000_v22  ;;  %1182 = vmatpush.bf16.msra.mxu1 %v1872_v25  ;;  %v1252_v22 = vld [vmem:[#allocation8] sm:$0xff] }
  0x9f   : > { %1220 = vmatpush.bf16.msra.mxu3 %v2128_v27  ;;  %1097 = vmatmul.bf16.gmra.mxu0 %v2945_v59 }
  0xa0   : > { %1164 = vmatpush.bf16.msra.mxu0 %v2108_v33 }
  0xa1   : > { %1135 = vmatmul.bf16.gmra.mxu2 %v2935_v0  ;;  %1116 = vmatmul.bf16.gmra.mxu1 %v2948_v62 }
  0xa2   : > { %1202 = vmatpush.bf16.msra.mxu2 %v1984_v34  ;;  %1183 = vmatpush.bf16.msra.mxu1 %v1856_v37  ;;  %v1257_v34 = vmul.f32 %v1253_v31, %v2974_v29 }
  0xa3   : > { %1221 = vmatpush.bf16.msra.mxu3 %v2112_v39 }
  0xa4   : > { %1154 = vmatmul.bf16.gmra.mxu3 %v2945_v59  ;;  %1165 = vmatpush.bf16.msra.mxu0 %v2092_v45 }
  0xa6   : > { %1203 = vmatpush.bf16.msra.mxu2 %v1968_v46  ;;  %1184 = vmatpush.bf16.msra.mxu1 %v1840_v49  ;;  %v1340_v49 = vld [vmem:[#allocation9] sm:$0xff] }
  0xa7   : > { %1222 = vmatpush.bf16.msra.mxu3 %v2096_v51 }
  0xa8   : > { %1166 = vmatpush.bf16.msra.mxu0 %v2076_v57 }
  0xaa   : > { %1204 = vmatpush.bf16.msra.mxu2 %v1952_v58  ;;  %1185 = vmatpush.bf16.msra.mxu1 %v1824_v2  ;;  %v2990_v2 = vld [vmem:[#allocation13 + $0x18] sm:$0xff] }
  0xab   : > { %1223 = vmatpush.bf16.msra.mxu3 %v2080_v4  ;;  %v1255_v4 = vld [vmem:[#allocation8 + $0x18] sm:$0xff] }
  0xac   : > { %1167 = vmatpush.bf16.msra.mxu0 %v2060_v10  ;;  %v1259_v9 = vmul.f32 %v1255_v4, %v2990_v2 }
  0xae   : > { %1205 = vmatpush.bf16.msra.mxu2 %v1936_v11  ;;  %1186 = vmatpush.bf16.msra.mxu1 %v1808_v12  ;;  %v1341_v12 = vld [vmem:[#allocation9 + $0x8] sm:$0xff] }
  0xaf   : > { %1224 = vmatpush.bf16.msra.mxu3 %v2064_v13  ;;  %1168 = vmatmul.bf16.vlgmr.msra.gmra.mxu0 %v2933_v61 }
  0xb1   : > { %1206 = vmatmul.bf16.vlgmr.msra.gmra.mxu2 %v2930_v60  ;;  %1187 = vmatmul.bf16.vlgmr.msra.gmra.mxu1 %v2924_v17  ;;  %v2970_v17 = vld [vmem:[#allocation13] sm:$0xff] }
  0xb2   : > { %v1344_v58 = vmul.f32 %v1340_v49, %v2970_v17  ;;  %v1343_v49 = vld [vmem:[#allocation9 + $0x18] sm:$0xff] }
  0xb4   : > { %1225 = vmatmul.bf16.vlgmr.msra.gmra.mxu3 %v2933_v61  ;;  %v416_v61 = vld [vmem:[%s2905_s18] sm:$0xff] }
  0xbf   : > { %1173 = vmatmul.bf16.gmra.mxu0 %v2948_v62 }
  0xc1   : > { %1211 = vmatmul.bf16.gmra.mxu2 %v2945_v59  ;;  %1192 = vmatmul.bf16.gmra.mxu1 %v2935_v0  ;;  %v1256_v59 = vmul.f32 %v1252_v22, %v2970_v17 }
  0xc4   : > { %1230 = vmatmul.bf16.gmra.mxu3 %v2948_v62 }
  0xec   : > { %v1017_v14 = vpop.f32.mrf.mxu0 }
  0xed   : > { %v1036_v15 = vpop.f32.mrf.mxu1 }
  0xee   : > { %v1037_v20 = vadd.f32 %v1036_v15, %v1017_v14 }
  0xf4   : > { %v1055_v16 = vpop.f32.mrf.mxu2  ;;  %v1074_v18 = vpop.f32.mrf.mxu3 }
  0xf5   : > { %v1019_v19 = vpop.f32.mrf.mxu0  ;;  %v1038_v60 = vpop.f32.mrf.mxu1  ;;  %v1056_v21 = vadd.f32 %v1055_v16, %v1037_v20  ;;  %v421_v20 = vld [vmem:[%s2905_s18 + $0x28] sm:$0xff] }
  0xf6   : > { %v1039_v62 = vadd.f32 %v1038_v60, %v1019_v19 }
  0xf7   : > { %v1236_v23 = vadd.f32 %v1056_v21, %v416_v61  ;;  %v1345_v21 = vmul.f32 %v1341_v12, %v2974_v29 }
  0xf9   : > { %v1260_v27 = vadd.f32 %v1256_v59, %v1236_v23 }
  0xfb   : > { %v2177_v32 = vmul.f32 -1.442695, %v1260_v27 }
  0xfc   : > { %v1057_v24 = vpop.f32.mrf.mxu2  ;;  %v1076_v0 = vpop.f32.mrf.mxu3 }
  0xfd   : > { %v1022_v25 = vpop.f32.mrf.mxu0  ;;  %v1041_v26 = vpop.f32.mrf.mxu1  ;;  %v1058_v28 = vadd.f32 %v1057_v24, %v1039_v62  ;;  %2413 = vpow2.f32 %v2177_v32 }
  0xfe   : > { %v1042_v40 = vadd.f32 %v1041_v26, %v1022_v25  ;;  %v1342_v26 = vld [vmem:[#allocation9 + $0x10] sm:$0xff] }
  0xff   : > { %v1240_v33 = vadd.f32 %v1058_v28, %v420_v30 }
 0x101   : > { %v1261_v39 = vadd.f32 %v1257_v34, %v1240_v33 }
 0x103   : > { %v2178_v45 = vmul.f32 -1.442695, %v1261_v39  ;;  %v2414_v50 = vpop.eup %2413  ;;  %v1346_v39 = vmul.f32 %v1342_v26, %v2980_v42 }
 0x104   : > { %v1060_v35 = vpop.f32.mrf.mxu2  ;;  %v2978_v36 = vpop.f32.mrf.mxu3  ;;  %v2988_v63 = vadd.f32 1.0, %v2414_v50 }
 0x105   : > { %v1024_v37 = vpop.f32.mrf.mxu0  ;;  %v1043_v38 = vpop.f32.mrf.mxu1  ;;  %v1061_v41 = vadd.f32 %v1060_v35, %v1042_v40  ;;  %2415 = vpow2.f32 %v2178_v45  ;;  %v425_v35 = vld [vmem:[%s2905_s18 + $0x48] sm:$0xff] }
 0x106   : > { %v1044_v56 = vadd.f32 %v1043_v38, %v1024_v37  ;;  %2417 = vrcp.f32 %v2988_v63  ;;  %vm1285_vm3 = vweird.f32 %v2988_v63 }
 0x107   : > { %v1244_v51 = vadd.f32 %v1061_v41, %v424_v43 }
 0x109   : > { %v1262_v1 = vadd.f32 %v1258_v52, %v1244_v51 }
 0x10b   : > { %v2416_v13 = vpop.eup %2415  ;;  %v2179_v14 = vmul.f32 -1.442695, %v1262_v1 }
 0x10c   : > { %v1062_v46 = vpop.f32.mrf.mxu2  ;;  %v2983_v47 = vpop.f32.mrf.mxu3  ;;  %v3001_v61 = vadd.f32 1.0, %v2416_v13 }
 0x10d   : > { %v1093_v48 = vpop.f32.mrf.mxu0  ;;  %v1063_v3 = vadd.f32 %v1062_v46, %v1044_v56  ;;  %v3003_v59 = vpop.eup %2417 }
 0x10e   : > { %v1094_v53 = vadd.f32 %v1093_v48, %v1074_v18  ;;  %v1112_v54 = vpop.f32.mrf.mxu1  ;;  %v1281_v28 = vmul.f32 %v3003_v59, %v2988_v63  ;;  %vm1286_vm2 = vweird.f32 %v3003_v59  ;;  %vm1300_vm10 = vweird.f32 %v3001_v61 }
 0x10f   : > { %v1248_v15 = vadd.f32 %v1063_v3, %v428_v6  ;;  %vm3058_vm4 = vmor %vm1285_vm3, %vm1286_vm2 }
 0x110   : > { %v1113_v57 = vadd.f32 %v1112_v54, %v1094_v53  ;;  %v1282_v40 = vsub.f32 1.0, %v1281_v28 }
 0x111   : > { %v1263_v22 = vadd.f32 %v1259_v9, %v1248_v15 }
 0x112   : > { %v1237_v5 = vadd.f32 %v1113_v57, %v417_v55  ;;  %v1283_v55 = vmul.f32 %v3003_v59, %v1282_v40 }
 0x113   : > { %v2180_v30 = vmul.f32 -1.442695, %v1263_v22  ;;  %v1291_v22 = vand.u32 2147483648, %v2988_v63 }
 0x114   : > { %v1348_v7 = vadd.f32 %v1344_v58, %v1237_v5  ;;  %v2993_v8 = vpop.f32.mrf.mxu2  ;;  %v429_v58 = vld [vmem:[%s2905_s18 + $0x68] sm:$0xff]  ;;  %v1347_v5 = vmul.f32 %v1343_v49, %v2990_v2  ;;  %v1284_v9 = vadd.f32 %v3003_v59, %v1283_v55 }
 0x115   : > { %v1095_v11 = vpop.f32.mrf.mxu0 }
 0x116   : > { %v2181_v16 = vmul.f32 -1.442695, %v1348_v7  ;;  %v1096_v18 = vadd.f32 %v1095_v11, %v1076_v0  ;;  %v1114_v19 = vpop.f32.mrf.mxu1  ;;  %v1288_v26 = vsel %vm3058_vm4, %v3003_v59, %v1284_v9 }
 0x117   : > { %v2997_v10 = vpop.f32.mrf.mxu3 }
 0x118   : > { %2419 = vpow2.f32 %v2181_v16  ;;  %v1115_v60 = vadd.f32 %v1114_v19, %v1096_v18  ;;  %v1151_v13 = vadd.f32 %v2997_v10, %v2993_v8  ;;  %v1289_v16 = vand.u32 2147483647, %v2988_v63 }
 0x119   : > { %2421 = vpow2.f32 %v2179_v14  ;;  %v1304_v8 = vand.u32 2147483647, %v3001_v61  ;;  %v1306_v10 = vand.u32 2147483648, %v3001_v61 }
 0x11a   : > { %v1241_v23 = vadd.f32 %v1115_v60, %v421_v20  ;;  %2423 = vrcp.f32 %v3001_v61  ;;  %v418_v20 = vld [vmem:[%s2905_s18 + $0x10] sm:$0xff]  ;;  %vm1290_vm9 = vcmp.eq.f32.partialorder %v1289_v16, 8.507059e+37  ;;  %v419_v16 = vld [vmem:[%s2905_s18 + $0x18] sm:$0xff] }
 0x11b   : > { %vm3097_vm11 = vcmp.eq.f32.partialorder %v1304_v8, 8.507059e+37 }
 0x11c   : > { %v1349_v24 = vadd.f32 %v1345_v21, %v1241_v23  ;;  %v3005_v25 = vpop.f32.mrf.mxu2 }
 0x11d   : > { %v1098_v62 = vpop.f32.mrf.mxu0 }
 0x11e   : > { %v2420_v27 = vpop.eup %2419  ;;  %v2182_v31 = vmul.f32 -1.442695, %v1349_v24  ;;  %v1099_v32 = vadd.f32 %v1098_v62, %v2978_v36  ;;  %v1117_v33 = vpop.f32.mrf.mxu1 }
 0x11f   : > { %v3008_v0 = vpop.f32.mrf.mxu3  ;;  %v3013_v34 = vadd.f32 1.0, %v2420_v27  ;;  %v2422_v37 = vpop.eup %2421 }
 0x120   : > { %2425 = vpow2.f32 %v2182_v31  ;;  %v1118_v38 = vadd.f32 %v1117_v33, %v1099_v32  ;;  %v3018_v43 = vpop.eup %2423  ;;  %v3020_v44 = vadd.f32 1.0, %v2422_v37 }
 0x121   : > { %2427 = vrcp.f32 %v3013_v34  ;;  %v1296_v51 = vmul.f32 %v3018_v43, %v3001_v61  ;;  %v1379_v59 = vand.u32 2147483648, %v3013_v34  ;;  %vm1373_vm6 = vweird.f32 %v3013_v34 }
 0x122   : > { %2429 = vpow2.f32 %v2180_v30  ;;  %v1245_v41 = vadd.f32 %v1118_v38, %v425_v35  ;;  %v1377_v35 = vand.u32 2147483647, %v3013_v34  ;;  %vm1301_vm7 = vweird.f32 %v3018_v43 }
 0x123   : > { %2431 = vrcp.f32 %v3020_v44  ;;  %vm3106_vm13 = vmor %vm1300_vm10, %vm1301_vm7  ;;  %vm1315_vm0 = vweird.f32 %v3020_v44 }
 0x124   : > { %v1350_v36 = vadd.f32 %v1346_v39, %v1245_v41  ;;  %v3022_v45 = vpop.f32.mrf.mxu2  ;;  %v1292_v41 = vor.u32 1.1754944e-38, %v1291_v22  ;;  %vm1378_vm12 = vcmp.eq.f32.partialorder %v1377_v35, 8.507059e+37  ;;  %v426_v39 = vld [vmem:[%s2905_s18 + $0x50] sm:$0xff] }
 0x125   : > { %v1100_v48 = vpop.f32.mrf.mxu0 }
 0x126   : > { %v2426_v50 = vpop.eup %2425  ;;  %v2183_v52 = vmul.f32 -1.442695, %v1350_v36  ;;  %v1101_v53 = vadd.f32 %v1100_v48, %v2983_v47  ;;  %v1119_v54 = vpop.f32.mrf.mxu1  ;;  %v1297_v47 = vsub.f32 1.0, %v1296_v51  ;;  %v1153_v48 = vadd.f32 %v3008_v0, %v3005_v25 }
 0x127   : > { %v3024_v46 = vpop.f32.mrf.mxu3  ;;  %v3030_v56 = vpop.eup %2427  ;;  %v3033_v57 = vadd.f32 1.0, %v2426_v50  ;;  %v1380_v50 = vor.u32 1.1754944e-38, %v1379_v59  ;;  %v1319_v0 = vand.u32 2147483647, %v3020_v44 }
 0x128   : > { %v2430_v1 = vpop.eup %2429  ;;  %v1369_v3 = vmul.f32 %v3030_v56, %v3013_v34  ;;  %2433 = vpow2.f32 %v2183_v52  ;;  %v1120_v4 = vadd.f32 %v1119_v54, %v1101_v53  ;;  %v1298_v28 = vmul.f32 %v3018_v43, %v1297_v47 }
 0x129   : > { %2435 = vrcp.f32 %v3033_v57  ;;  %v3042_v11 = vadd.f32 1.0, %v2430_v1  ;;  %v3051_v18 = vpop.eup %2431  ;;  %vm1374_vm5 = vweird.f32 %v3030_v56  ;;  %v1307_v52 = vor.u32 1.1754944e-38, %v1306_v10 }
 0x12a   : > { %v1370_v6 = vsub.f32 1.0, %v1369_v3  ;;  %v1249_v7 = vadd.f32 %v1120_v4, %v429_v58  ;;  %v1311_v37 = vmul.f32 %v3051_v18, %v3020_v44  ;;  %vm3085_vm8 = vmor %vm1373_vm6, %vm1374_vm5  ;;  %v1299_v40 = vadd.f32 %v3018_v43, %v1298_v28 }
 0x12b   : > { %2437 = vrcp.f32 %v3042_v11  ;;  %v1293_v54 = vsel %vm1290_vm9, %v1292_v41, %v1288_v26  ;;  %vm1388_vm15 = vweird.f32 %v3033_v57  ;;  %v1392_v8 = vand.u32 2147483647, %v3033_v57 }
 0x12c   : > { %v1371_v12 = vmul.f32 %v3030_v56, %v1370_v6  ;;  %v1351_v14 = vadd.f32 %v1347_v5, %v1249_v7  ;;  %v3048_v15 = vpop.f32.mrf.mxu2  ;;  %v1312_v3 = vsub.f32 1.0, %v1311_v37  ;;  %v1303_v47 = vsel %vm3106_vm13, %v3018_v43, %v1299_v40 }
 0x12d   : > { %v1169_v60 = vpop.f32.mrf.mxu0  ;;  %v1394_v43 = vand.u32 2147483648, %v3033_v57  ;;  %vm1316_vm2 = vweird.f32 %v3051_v18  ;;  %v1308_v37 = vsel %vm3097_vm11, %v1307_v52, %v1303_v47  ;;  %vm1393_vm3 = vcmp.eq.f32.partialorder %v1392_v8, 8.507059e+37  ;;  %v1447_v47 = vld [vmem:[#allocation11 + $0x18] sm:$0xff] }
 0x12e   : > { %v2434_v23 = vpop.eup %2433  ;;  %v2184_v24 = vmul.f32 -1.442695, %v1351_v14  ;;  %v1170_v62 = vadd.f32 %v1169_v60, %v1151_v13  ;;  %v1188_v27 = vpop.f32.mrf.mxu1  ;;  %v1372_v63 = vadd.f32 %v3030_v56, %v1371_v12  ;;  %v1313_v26 = vmul.f32 %v3051_v18, %v1312_v3  ;;  %vm3168_vm6 = vmor %vm1315_vm0, %vm1316_vm2 }
 0x12f   : > { %v3053_v19 = vpop.f32.mrf.mxu3  ;;  %v3069_v30 = vpop.eup %2435  ;;  %v3072_v31 = vadd.f32 1.0, %v2434_v23  ;;  %v1395_v59 = vor.u32 1.1754944e-38, %v1394_v43  ;;  %vm3175_vm7 = vcmp.eq.f32.partialorder %v1319_v0, 8.507059e+37  ;;  %vm1330_vm9 = vweird.f32 %v3042_v11 }
 0x130   : > { %v1384_v32 = vmul.f32 %v3069_v30, %v3033_v57  ;;  %2439 = vpow2.f32 %v2184_v24  ;;  %v1238_v33 = vadd.f32 %v1170_v62, %v418_v20  ;;  %v1376_v34 = vsel %vm3085_vm8, %v3030_v56, %v1372_v63  ;;  %v422_v56 = vld [vmem:[%s2905_s18 + $0x30] sm:$0xff]  ;;  %v1444_v24 = vld [vmem:[#allocation11] sm:$0xff] }
 0x131   : > { %2441 = vrcp.f32 %v3072_v31  ;;  %v3101_v53 = vpop.eup %2437  ;;  %v1381_v4 = vsel %vm1378_vm12, %v1380_v50, %v1376_v34  ;;  %vm1389_vm14 = vweird.f32 %v3069_v30  ;;  %v1321_v57 = vand.u32 2147483648, %v3020_v44 }
 0x132   : > { %v1385_v38 = vsub.f32 1.0, %v1384_v32  ;;  %2443 = vtanh.f32 %v1238_v33  ;;  %v1428_v22 = vmul.f32 %v1381_v4, %v2970_v17  ;;  %v1326_v10 = vmul.f32 %v3101_v53, %v3042_v11  ;;  %vm3133_vm1 = vmor %vm1388_vm15, %vm1389_vm14  ;;  %v423_v4 = vld [vmem:[%s2905_s18 + $0x38] sm:$0xff] }
 0x133   : > { %v1156_v32 = vadd.f32 %v3024_v46, %v3022_v45  ;;  %v1314_v45 = vadd.f32 %v3051_v18, %v1313_v26  ;;  %vm1403_vm4 = vweird.f32 %v3072_v31  ;;  %vm1331_vm11 = vweird.f32 %v3101_v53 }
 0x134   : > { %v1386_v36 = vmul.f32 %v3069_v30, %v1385_v38  ;;  %v1207_v49 = vpop.f32.mrf.mxu2  ;;  %v1327_v41 = vsub.f32 1.0, %v1326_v10  ;;  %vm1332_vm15 = vmor %vm1330_vm9, %vm1331_vm11  ;;  %vm1592_vm9 = vsmask.f32 7938 }
 0x135   : > { %v1208_v55 = vadd.f32 %v1207_v49, %v1188_v27  ;;  %v1171_v61 = vpop.f32.mrf.mxu0  ;;  %v1318_v44 = vsel %vm3168_vm6, %v3051_v18, %v1314_v45 }
 0x136   : > { %v2440_v1 = vpop.eup %2439  ;;  %v1172_v5 = vadd.f32 %v1171_v61, %v1153_v48  ;;  %v1387_v12 = vadd.f32 %v3069_v30, %v1386_v36  ;;  %v1190_v60 = vpop.f32.mrf.mxu1 }
 0x137   : > { %v1226_v58 = vpop.f32.mrf.mxu3  ;;  %v3114_v6 = vpop.eup %2441  ;;  %v3116_v7 = vadd.f32 1.0, %v2440_v1 }
 0x138   : > { %v1227_v9 = vadd.f32 %v1226_v58, %v1208_v55  ;;  %v2444_v13 = vpop.eup %2443  ;;  %v1399_v14 = vmul.f32 %v3114_v6, %v3072_v31  ;;  %v1242_v20 = vadd.f32 %v1172_v5, %v422_v56  ;;  %v1391_v17 = vsel %vm3133_vm1, %v3069_v30, %v1387_v12  ;;  %v1445_v5 = vld [vmem:[#allocation11 + $0x8] sm:$0xff] }
 0x139   : > { %2445 = vrcp.f32 %v3116_v7  ;;  %v1436_v21 = vmul.f32 %v2444_v13, %v1293_v54  ;;  %v1396_v34 = vsel %vm1393_vm3, %v1395_v59, %v1391_v17  ;;  %vm1404_vm5 = vweird.f32 %v3114_v6 }
 0x13a   : > { %v1400_v23 = vsub.f32 1.0, %v1399_v14  ;;  %2447 = vtanh.f32 %v1242_v20  ;;  %v1239_v27 = vadd.f32 %v1227_v9, %v419_v16  ;;  %v1407_v54 = vand.u32 2147483647, %v3072_v31  ;;  %vm3183_vm8 = vmor %vm1403_vm4, %vm1404_vm5 }
 0x13b   : > { %v3138_v28 = vadd.f32 %v1436_v21, %v1428_v22  ;;  %v1409_v55 = vand.u32 2147483648, %v3072_v31  ;;  %v1429_v25 = vmul.f32 %v1396_v34, %v2974_v29  ;;  %v1322_v9 = vor.u32 1.1754944e-38, %v1321_v57 }
 0x13c   : > { %v1401_v63 = vmul.f32 %v3114_v6, %v1400_v23  ;;  %v1209_v33 = vpop.f32.mrf.mxu2  ;;  %v1158_v14 = vadd.f32 %v3053_v19, %v3048_v15  ;;  %vm1408_vm10 = vcmp.eq.f32.partialorder %v1407_v54, 8.507059e+37  ;;  %vm1418_vm13 = vweird.f32 %v3116_v7 }
 0x13d   : > { %v1448_v35 = vmul.f32 %v1444_v24, %v3138_v28  ;;  %1540 = vst [vmem:[#allocation13] sm:$0xff] %v3138_v28  ;;  %v1210_v38 = vadd.f32 %v1209_v33, %v1190_v60  ;;  %v1174_v40 = vpop.f32.mrf.mxu0  ;;  %v1410_v20 = vor.u32 1.1754944e-38, %v1409_v55  ;;  %v1328_v60 = vmul.f32 %v3101_v53, %v1327_v41 }
 0x13e   : > { %v1175_v36 = vadd.f32 %v1174_v40, %v1156_v32  ;;  %v1402_v49 = vadd.f32 %v3114_v6, %v1401_v63  ;;  %v1193_v29 = vpop.f32.mrf.mxu1  ;;  %v1323_v8 = vsel %vm3175_vm7, %v1322_v9, %v1318_v44  ;;  %v1424_v63 = vand.u32 2147483648, %v3116_v7 }
 0x13f   : > { %v1228_v30 = vpop.f32.mrf.mxu3  ;;  %v3154_v46 = vpop.eup %2445  ;;  %v1452_v48 = vadd.f32 %v1448_v35, %v1239_v27  ;;  %v427_v27 = vld [vmem:[%s2905_s18 + $0x58] sm:$0xff]  ;;  %v1329_v57 = vadd.f32 %v3101_v53, %v1328_v60  ;;  %v1336_v40 = vand.u32 2147483648, %v3042_v11  ;;  %vm1591_vm7 = vcmask 1043456  }
 0x140   : > { %v2448_v50 = vpop.eup %2447  ;;  %v1414_v51 = vmul.f32 %v3154_v46, %v3116_v7  ;;  %v1246_v52 = vadd.f32 %v1175_v36, %v426_v39  ;;  %v1229_v61 = vadd.f32 %v1228_v30, %v1210_v38  ;;  %v1406_v0 = vsel %vm3183_vm8, %v3114_v6, %v1402_v49  ;;  %v430_v6 = vld [vmem:[%s2905_s18 + $0x70] sm:$0xff] }
 0x141   : > { %v2185_v58 = vmul.f32 -1.442695, %v1452_v48  ;;  %v1437_v56 = vmul.f32 %v2448_v50, %v1308_v37  ;;  %v1411_v23 = vsel %vm1408_vm10, %v1410_v20, %v1406_v0  ;;  %vm1419_vm12 = vweird.f32 %v3154_v46  ;;  %v1446_v30 = vld [vmem:[#allocation11 + $0x10] sm:$0xff] }
 0x142   : > { %v1415_v3 = vsub.f32 1.0, %v1414_v51  ;;  %2449 = vtanh.f32 %v1246_v52  ;;  %v1243_v43 = vadd.f32 %v1229_v61, %v423_v4  ;;  %v1430_v35 = vmul.f32 %v1411_v23, %v2980_v42  ;;  %vm3220_vm14 = vmor %vm1418_vm13, %vm1419_vm12 }
 0x143   : > { %2451 = vpow2.f32 %v2185_v58  ;;  %v3187_v13 = vadd.f32 %v1437_v56, %v1429_v25  ;;  %v1422_v37 = vand.u32 2147483647, %v3116_v7  ;;  %v1334_v39 = vand.u32 2147483647, %v3042_v11  ;;  %vm3261_vm12 = vmand %vm1591_vm7, %vm1592_vm9 }
 0x144   : > { %v1416_v31 = vmul.f32 %v3154_v46, %v1415_v3  ;;  %v1212_v16 = vpop.f32.mrf.mxu2  ;;  %v1425_v48 = vor.u32 1.1754944e-38, %v1424_v63  ;;  %v1333_v50 = vsel %vm1332_vm15, %v3101_v53, %v1329_v57  ;;  %v1337_v52 = vor.u32 1.1754944e-38, %v1336_v40  ;;  %v1594_v40 = vld [vmem:[#allocation2] sm:$0xf] }
 0x145   : > { %v1449_v21 = vmul.f32 %v1445_v5, %v3187_v13  ;;  %1541 = vst [vmem:[#allocation13 + $0x8] sm:$0xff] %v3187_v13  ;;  %v1213_v18 = vadd.f32 %v1212_v16, %v1193_v29  ;;  %v1176_v22 = vpop.f32.mrf.mxu0  ;;  %vm1423_vm0 = vcmp.eq.f32.partialorder %v1422_v37, 8.507059e+37  ;;  %vm1335_vm1 = vcmp.eq.f32.partialorder %v1334_v39, 8.507059e+37  ;;  %v431_v5 = vld [vmem:[%s2905_s18 + $0x78] sm:$0xff]  ;;  %s1627_s18 = sshll.u32 %s2920_s12, 4  ;;  %s1628_s18 = int_to_ptr.vmem [resolvable:$true] %s1627_s18 }
 0x146   : > { %v1177_v15 = vadd.f32 %v1176_v22, %v1158_v14  ;;  %v1417_v62 = vadd.f32 %v3154_v46, %v1416_v31  ;;  %v1195_v7 = vpop.f32.mrf.mxu1  ;;  %v1338_v58 = vsel %vm1335_vm1, %v1337_v52, %v1333_v50  ;;  %vm1549_vm15 = vsmask.f32 4368 }
 0x147   : > { %v1231_v10 = vpop.f32.mrf.mxu3  ;;  %v1453_v19 = vadd.f32 %v1449_v21, %v1243_v43  ;;  %vm1598_vm1 = vcmask 1040384  }
 0x148   : > { %v1232_v24 = vadd.f32 %v1231_v10, %v1213_v18  ;;  %v2450_v26 = vpop.eup %2449  ;;  %v1250_v17 = vadd.f32 %v1177_v15, %v430_v6  ;;  %v1421_v42 = vsel %vm3220_vm14, %v3154_v46, %v1417_v62  ;;  %vm1548_vm14 = vsmask.f32 256 }
 0x149   : > { %v2452_v32 = vpop.eup %2451  ;;  %v2186_v33 = vmul.f32 -1.442695, %v1453_v19  ;;  %v1438_v59 = vmul.f32 %v2450_v26, %v1323_v8  ;;  %v1426_v46 = vsel %vm1423_vm0, %v1425_v48, %v1421_v42 }
 0x14a   : > { %v3214_v38 = vadd.f32 1.0, %v2452_v32  ;;  %2453 = vtanh.f32 %v1250_v17  ;;  %v1247_v34 = vadd.f32 %v1232_v24, %v427_v27  ;;  %v1431_v1 = vmul.f32 %v1426_v46, %v2990_v2 }
 0x14b   : > { %2455 = vpow2.f32 %v2186_v33  ;;  %v3224_v36 = vadd.f32 %v1438_v59, %v1430_v35 }
 0x14c   : > { %2457 = vrcp.f32 %v3214_v38  ;;  %v1214_v45 = vpop.f32.mrf.mxu2  ;;  %v1483_v2 = vand.u32 2147483648, %v3214_v38  ;;  %v1481_v16 = vand.u32 2147483647, %v3214_v38  ;;  %vm1477_vm3 = vweird.f32 %v3214_v38 }
 0x14d   : > { %v1450_v49 = vmul.f32 %v1446_v30, %v3224_v36  ;;  %1542 = vst [vmem:[#allocation13 + $0x10] sm:$0xff] %v3224_v36  ;;  %v1215_v51 = vadd.f32 %v1214_v45, %v1195_v7 }
 0x14e   : > { %v1484_v6 = vor.u32 1.1754944e-38, %v1483_v2  ;;  %vm1482_vm5 = vcmp.eq.f32.partialorder %v1481_v16, 8.507059e+37 }
 0x14f   : > { %v1454_v54 = vadd.f32 %v1450_v49, %v1247_v34  ;;  %v1233_v11 = vpop.f32.mrf.mxu3 }
 0x150   : > { %v2454_v55 = vpop.eup %2453  ;;  %v1234_v25 = vadd.f32 %v1233_v11, %v1215_v51 }
 0x151   : > { %v2456_v56 = vpop.eup %2455  ;;  %v2187_v53 = vmul.f32 -1.442695, %v1454_v54  ;;  %v1439_v61 = vmul.f32 %v2454_v55, %v1338_v58 }
 0x152   : > { %v2458_v3 = vpop.eup %2457  ;;  %v1469_v4 = vadd.f32 1.0, %v2456_v56  ;;  %v1251_v44 = vadd.f32 %v1234_v25, %v431_v5 }
 0x153   : > { %v1473_v9 = vmul.f32 %v2458_v3, %v3214_v38  ;;  %2459 = vpow2.f32 %v2187_v53  ;;  %v3245_v29 = vadd.f32 %v1439_v61, %v1431_v1  ;;  %vm1478_vm2 = vweird.f32 %v2458_v3 }
 0x154   : > { %2461 = vrcp.f32 %v1469_v4  ;;  %vm1479_vm4 = vmor %vm1477_vm3, %vm1478_vm2  ;;  %v1498_v19 = vand.u32 2147483648, %v1469_v4  ;;  %v1496_v24 = vand.u32 2147483647, %v1469_v4  ;;  %vm1492_vm8 = vweird.f32 %v1469_v4 }
 0x155   : > { %v1474_v12 = vsub.f32 1.0, %v1473_v9  ;;  %v1451_v0 = vmul.f32 %v1447_v47, %v3245_v29  ;;  %1543 = vst [vmem:[#allocation13 + $0x18] sm:$0xff] %v3245_v29  ;;  %2463 = vtanh.f32 %v3138_v28 }
 0x156   : > { %2327 = dma.vmem_to_hbm [thread:$0]  (%p3365_p1), %s1642_s13, 512, %s1644_s30, [#allocation14], %s2748_s7, %s2748_s7, %s2749_s9   ;;  %vm1497_vm11 = vcmp.eq.f32.partialorder %v1496_v24, 8.507059e+37  ;;  %v1499_v33 = vor.u32 1.1754944e-38, %v1498_v19 }
 0x157   : > { %v1475_v31 = vmul.f32 %v2458_v3, %v1474_v12  ;;  %v1455_v14 = vadd.f32 %v1451_v0, %v1251_v44  ;;  %s2669_s13 = sshra.s32 %s1630_s8, 4  ;;  %s2675_s7 = scalar_lea.hbm %s3337_s5, 128  ;;  %s2670_s13 = int_to_ptr.hbm [resolvable:$true] %s2669_s13 }
 0x158   : > { %s2671_s15 = scalar_lea.hbm %s2670_s13, 16  ;;  %p2676_p10 = scmp.lt.s32.totalorder %s2670_s13, %s3337_s5 }
 0x159   : > { %v2460_v20 = vpop.eup %2459  ;;  %v2188_v60 = vmul.f32 -1.442695, %v1455_v14  ;;  %v1476_v43 = vadd.f32 %v2458_v3, %v1475_v31  ;;  %p2672_p4 = scmp.ne.s32.totalorder %s2670_s13, %s2671_s15  ;;  %p2677_p11 = scmp.lt.s32.totalorder %s2675_s7, %s2671_s15 }
 0x15a   : > { %v2462_v21 = vpop.eup %2461  ;;  %v1470_v18 = vadd.f32 1.0, %v2460_v20 }
 0x15b   : > { %v1488_v22 = vmul.f32 %v2462_v21, %v1469_v4  ;;  %2465 = vpow2.f32 %v2188_v60  ;;  %v1480_v28 = vsel %vm1479_vm4, %v2458_v3, %v1476_v43  ;;  %v2464_v8 = vpop.eup %2463  ;;  %vm1493_vm6 = vweird.f32 %v2462_v21  ;;  %vm3271_vm4 = vmor %vm1548_vm14, %vm1549_vm15  ;;  %v1600_v4 = vld [vmem:[#allocation2 + $0x8] sm:$0x1]  ;;  %p2673_p8 = pnand %p2672_p4, %p2871_p3  ;;  %p2678_p12 = por %p2677_p11, %p2676_p10 }
 0x15c   : > { %2467 = vrcp.f32 %v1470_v18  ;;  %v1485_v10 = vsel %vm1482_vm5, %v1484_v6, %v1480_v28  ;;  %vm1494_vm10 = vmor %vm1492_vm8, %vm1493_vm6  ;;  %v1513_v7 = vand.u32 2147483648, %v1470_v18  ;;  %v1511_v45 = vand.u32 2147483647, %v1470_v18  ;;  %v1603_v28 = vld [vmem:[#allocation2 + $0xc] sm:$0xf] }
 0x15d   : > { %v1489_v23 = vsub.f32 1.0, %v1488_v22  ;;  %v1536_v15 = vmul.f32 %v2464_v8, %v1485_v10  ;;  %2469 = vtanh.f32 %v3187_v13  ;;  %vm1507_vm0 = vweird.f32 %v1470_v18  ;;  %vm3276_vm5 = vmand %vm1598_vm1, %vm1548_vm14  ;;  %p2674_p9 = pneg %p2673_p8 }
 0x15e   : > { %vm1512_vm3 = vcmp.eq.f32.partialorder %v1511_v45, 8.507059e+37 }
 0x15f   : > { %v1490_v62 = vmul.f32 %v2462_v21, %v1489_v23  ;;  %v1544_v26 = vpack.c.bf16 %v1536_v15, %v1536_v15  ;;  %p2679_p13 = pnand %p2678_p12, %p2674_p9 }
 0x161   : > { %v2466_v27 = vpop.eup %2465  ;;  %v1491_v17 = vadd.f32 %v2462_v21, %v1490_v62  ;;  %v1552_v57 = vshrl.u32 %v1544_v26, 16  ;;  %v1555_v13 = vshll.u32 %v1544_v26, 16 }
 0x162   : > { %v2468_v63 = vpop.eup %2467  ;;  %v3257_v32 = vadd.f32 1.0, %v2466_v27 }
 0x163   : > { %v1503_v59 = vmul.f32 %v2468_v63, %v1470_v18  ;;  %v1495_v35 = vsel %vm1494_vm10, %v2462_v21, %v1491_v17  ;;  %v1554_v37 = vrot.slane %v1552_v57, 7  ;;  %v2470_v38 = vpop.eup %2469  ;;  %vm1508_vm13 = vweird.f32 %v2468_v63 }
 0x164   : > { %2471 = vrcp.f32 %v3257_v32  ;;  %v1500_v30 = vsel %vm1497_vm11, %v1499_v33, %v1495_v35  ;;  %vm1509_vm2 = vmor %vm1507_vm0, %vm1508_vm13  ;;  %v1528_v44 = vand.u32 2147483648, %v3257_v32  ;;  %v1526_v0 = vand.u32 2147483647, %v3257_v32 }
 0x165   : > { %v1504_v41 = vsub.f32 1.0, %v1503_v59  ;;  %v1537_v34 = vmul.f32 %v2470_v38, %v1500_v30  ;;  %v1557_v42 = vor.u32 %v1555_v13, %v1554_v37  ;;  %2473 = vtanh.f32 %v3224_v36 }
 0x166   : > { %v1514_v36 = vor.u32 1.1754944e-38, %v1513_v7  ;;  %v1558_v1 = vrot.slane %v1554_v37, 4  ;;  %2475 = vtanh.f32 %v3245_v29  ;;  %vm1522_vm7 = vweird.f32 %v3257_v32 }
 0x167   : > { %v1505_v48 = vmul.f32 %v2468_v63, %v1504_v41  ;;  %v1545_v49 = vpack.c.bf16 %v1537_v34, %v1537_v34  ;;  %v1595_v50 = vsel %vm3261_vm12, %v1557_v42, %v1594_v40  ;;  %v2299_v51 = vpack.c.bf16 %v1537_v34, %v1536_v15 }
 0x168   : > { %1596 = vst [vmem:[#allocation2] sm:$0xf] %v1595_v50  ;;  %v1529_v60 = vor.u32 1.1754944e-38, %v1528_v44  ;;  %vm1527_vm9 = vcmp.eq.f32.partialorder %v1526_v0, 8.507059e+37 }
 0x169   : > { %v1506_v52 = vadd.f32 %v2468_v63, %v1505_v48  ;;  %v1560_v46 = vshrl.u32 %v1545_v49, 16  ;;  %2300 = vst [vmem:[%s2920_s12] sm:$0xff] %v2299_v51   ;;  %v1563_v53 = vshll.u32 %v1545_v49, 16 }
 0x16a   : > { %v2472_v54 = vpop.eup %2471 }
 0x16b   : > { %v1518_v55 = vmul.f32 %v2472_v54, %v3257_v32  ;;  %v1510_v58 = vsel %vm1509_vm2, %v2468_v63, %v1506_v52  ;;  %v1562_v56 = vrot.slane %v1560_v46, 7  ;;  %v2474_v61 = vpop.eup %2473  ;;  %vm1523_vm6 = vweird.f32 %v2472_v54 }
 0x16c   : > { %v1515_v25 = vsel %vm1512_vm3, %v1514_v36, %v1510_v58  ;;  %vm1524_vm8 = vmor %vm1522_vm7, %vm1523_vm6  ;;  %v2476_v6 = vpop.eup %2475 }
 0x16d   : > { %v1519_v5 = vsub.f32 1.0, %v1518_v55  ;;  %v1538_v47 = vmul.f32 %v2474_v61, %v1515_v25  ;;  %v1565_v9 = vor.u32 %v1563_v53, %v1562_v56  ;;  %v1567_v12 = vrot.slane %v1562_v56, 4 }
 0x16f   : > { %v1520_v2 = vmul.f32 %v2472_v54, %v1519_v5  ;;  %v1546_v31 = vpack.c.bf16 %v1538_v47, %v1538_v47  ;;  %v1566_v14 = vsel %vm3271_vm4, %v1558_v1, %v1565_v9  ;;  %v1601_v16 = vsel %vm3276_vm5, %v1567_v12, %v1600_v4 }
 0x170   : > { %1597 = vst [vmem:[#allocation2 + $0x4] sm:$0xf] %v1566_v14 }
 0x171   : > { %v1521_v29 = vadd.f32 %v2472_v54, %v1520_v2  ;;  %v1569_v20 = vshrl.u32 %v1546_v31, 16  ;;  %1602 = vst [vmem:[#allocation2 + $0x8] sm:$0x1] %v1601_v16  ;;  %v1572_v18 = vshll.u32 %v1546_v31, 16 }
 0x173   : > { %v1525_v43 = vsel %vm1524_vm8, %v2472_v54, %v1521_v29  ;;  %v1571_v21 = vrot.slane %v1569_v20, 7 }
 0x174   : > { %v1530_v22 = vsel %vm1527_vm9, %v1529_v60, %v1525_v43 }
 0x175   : > { %v1539_v8 = vmul.f32 %v2476_v6, %v1530_v22  ;;  %v1574_v10 = vor.u32 %v1572_v18, %v1571_v21 }
 0x177   : > { %v1547_v23 = vpack.c.bf16 %v1539_v8, %v1539_v8  ;;  %v1604_v15 = vsel %vm3261_vm12, %v1574_v10, %v1603_v28  ;;  %v2304_v19 = vpack.c.bf16 %v1539_v8, %v1538_v47 }
 0x178   : > { %1605 = vst [vmem:[#allocation2 + $0xc] sm:$0xf] %v1604_v15 }
 0x179   : > { %v1577_v24 = vshrl.u32 %v1547_v23, 16  ;;  %2306 = vst [vmem:[%s2920_s12 + $0x8] sm:$0xff] %v2304_v19  }
 0x17a   : > { %2682 = shalt.err (!%p2679_p13)
}
 0x17b   : > { %s2750_s29 = smov 64   ;;  %s2751_s12 = smov 4   ;;  %v1579_v62 = vrot.slane %v1577_v24, 7  ;;  %v1580_v26 = vshll.u32 %v1547_v23, 16  ;;  %v1607_v27 = vld [vmem:[#allocation2 + $0x14] sm:$0x1] }
 0x17c   : > { %2325 = dma.vmem_to_hbm [thread:$0]  (%p2871_p3), %s1628_s18, 256, %s1630_s8, %s1615_s27, %s2750_s29, %s2750_s29, %s2751_s12   ;;  %v1575_v17 = vrot.slane %v1571_v21, 4 }
 0x17d   : > { %v1582_v57 = vor.u32 %v1580_v26, %v1579_v62  ;;  %v1584_v63 = vrot.slane %v1579_v62, 4  ;;  %p3372_p0 = pmov %p3365_p1 }
 0x17f   : > { %v1583_v32 = vsel %vm3271_vm4, %v1575_v17, %v1582_v57  ;;  %v1608_v33 = vsel %vm3276_vm5, %v1584_v63, %v1607_v27 }
 0x180   : > { %1606 = vst [vmem:[#allocation2 + $0x10] sm:$0xf] %v1583_v32 }
 0x181   : > { %1609 = vst [vmem:[#allocation2 + $0x14] sm:$0x1] %v1608_v33 }
 0x182   : > { %2712 = dma.done.wait (%p3372_p0), [#allocation14], 512   ;;  %p3373_p5 = pmov %p3372_p0 }
 0x184   : > { %2714 = vsyncadd (%p3373_p5), [#allocation14], 4294966784 }
 0x185 PF: > { %p2363_p3 = scmp.ge.s32.totalorder %s2733_s24, 2  ;;  %s1663_s19 = sand.u32 1, %s2721_s21  }
 0x186   : > { %s1664_s10 = scalar_lea.sflag [#allocation5], %s1663_s19 }
 0x187   : > { %p2349_p7 = pnand %p2363_p3, %p2822_p6 }
 0x189   : > { %p2350_p2 = pneg %p2349_p7 }
 0x18b   : > { %2716 = dma.done.wait (%p2350_p2), %s1664_s10, 256  }
 0x18c   : > { %2718 = vsyncadd (%p2350_p2), %s1664_s10, 4294967040  ;;  %p23_p1 = scmp.ge.s32.totalorder %s2861_s14, 10   ;;  %s3374_s21 = smov %s2725_s22 }
 0x18d   : > { %s3375_s22 = smov %s2729_s23  ;;  %s3376_s23 = smov %s2877_s20 }
 0x18e   : > { %s3377_s24 = smov %s2861_s14  ;;  %25 = sbr.rel (!%p23_p1) target bundleno = 8 (0x8), region = 113 }
 0x193   :  { %1670 = vsyncpa [#allocation4], 1 }
 0x194   :  { %1672 = vsyncpa [#allocation4 + $0x1], 1 }
 0x195   :  { %1673 = vsyncpa [#allocation7], 1 }
 0x196   :  { %1674 = vsyncpa [#allocation10], 1 }
 0x197   :  { %1675 = vsyncpa [#allocation5], 1 }
 0x198   :  { %1677 = vsyncpa [#allocation5 + $0x1], 1 }
 0x199   :  { %1678 = vsyncpa [#allocation14], 1 }

</bundles_post_ra>
